<compile_context>
chip_gen: v6e
topology: v6e:2x2x1
jax: 0.10.0
libtpu: 0.0.40
codegen_flags: <defaults>
</compile_context>

<pallas_src>
import jax
import jax.numpy as jnp
from jax import lax
from jax.experimental import pallas as pl
from jax.experimental.pallas import tpu as pltpu

_MIB = 1024 * 1024
_GATHER_SLOTS = 8  # in-flight row DMAs per token block (review: 4-8)


def _round_up(x, m):
    return ((x + m - 1) // m) * m


def _vmem_capacity_bytes():
    try:
        return int(pltpu.get_tpu_info().vmem_capacity_bytes)
    except Exception:
        return 64 * _MIB  # conservative fallback: v7x physical VMEM


def _split_f32_to_3bf16(w):
    """Exact 3-way bf16 decomposition: hi + mid + lo == w to within ~1 f32 ulp."""
    hi = w.astype(jnp.bfloat16)
    r1 = w - hi.astype(jnp.float32)          # exact (Sterbenz)
    mid = r1.astype(jnp.bfloat16)
    r2 = r1 - mid.astype(jnp.float32)        # exact
    lo = r2.astype(jnp.bfloat16)
    return hi, mid, lo


# ---------------------------------------------------------------------------
# Path 1: HBM row-DMA gather (large vocab / any dtype).
# ---------------------------------------------------------------------------
def _gather_dma_kernel(ids_ref, w_hbm, out_ref, sem):
    # ids_ref: SMEM (N_pad,) int32 token ids (scalar-prefetched)
    # w_hbm:   HBM  (V, E) weight table (memory_space=pl.ANY, never tiled)
    # out_ref: VMEM (T, E) output tile for this token block
    # sem:     (_GATHER_SLOTS,) DMA semaphores -> 8 row copies in flight
    i = pl.program_id(0)
    t_block = out_ref.shape[0]
    base = i * t_block

    def start(t):
        row = ids_ref[base + t]
        pltpu.make_async_copy(
            w_hbm.at[pl.ds(row, 1)],
            out_ref.at[pl.ds(t, 1)],
            sem.at[t % _GATHER_SLOTS],
        ).start()

    def wait(t):
        # Source index is irrelevant for wait (shape + semaphore only).
        pltpu.make_async_copy(
            w_hbm.at[pl.ds(0, 1)],
            out_ref.at[pl.ds(t, 1)],
            sem.at[t % _GATHER_SLOTS],
        ).wait()

    # Prime the DMA queue (static unroll).
    for t in range(min(_GATHER_SLOTS, t_block)):
        start(t)

    @pl.loop(0, t_block)
    def _(t):
        wait(t)

        @pl.when(t + _GATHER_SLOTS < t_block)
        def _():
            start(t + _GATHER_SLOTS)


def _lookup_gather(flat_ids, weight, T, N_pad, vmem_limit):
    N = flat_ids.shape[0]
    V, E = weight.shape
    n_tok = N_pad // T
    itemsize = jnp.dtype(weight.dtype).itemsize
    # Row 0 is a valid row, so zero-padded ids are safe.
    ids1d = jnp.zeros((N_pad,), jnp.int32).at[:N].set(flat_ids)

    cost = pl.CostEstimate(
        flops=0,
        transcendentals=0,
        bytes_accessed=N_pad * 4 + 2 * N_pad * E * itemsize,
    )
    out = pl.pallas_call(
        _gather_dma_kernel,
        out_shape=jax.ShapeDtypeStruct((N_pad, E), weight.dtype),
        grid_spec=pltpu.PrefetchScalarGridSpec(
            num_scalar_prefetch=1,
            grid=(n_tok,),
            in_specs=[pl.BlockSpec(memory_space=pl.ANY)],       # weight stays in HBM
            out_specs=pl.BlockSpec((T, E), lambda i, ids: (i, 0)),
            scratch_shapes=[pltpu.SemaphoreType.DMA((_GATHER_SLOTS,))],
        ),
        compiler_params=pltpu.CompilerParams(
            dimension_semantics=("parallel",),
            vmem_limit_bytes=vmem_limit,
        ),
        cost_estimate=cost,
    )(ids1d, weight)
    return out  # (N_pad, E)


# ---------------------------------------------------------------------------
# Path 2: resident one-hot MXU gather (small vocab, f32 weights).
# ---------------------------------------------------------------------------
def _onehot_resident_kernel(ids_ref, w_hi_ref, w_mid_ref, w_lo_ref, out_ref):
    # ids_ref: VMEM (T, 1) int32 token ids
    # w_*_ref: VMEM (V_pad, E_pad) bf16 weight components (constant block -> resident)
    # out_ref: VMEM (T, E_pad)
    ids = ids_ref[...]
    t = ids.shape[0]
    v = w_hi_ref.shape[0]
    col = lax.broadcasted_iota(jnp.int32, (t, v), 1)
    onehot = (ids == col).astype(jnp.bfloat16)      # exact 0/1, single-pass MXU operand
    acc = jnp.dot(onehot, w_hi_ref[...], preferred_element_type=jnp.float32)
    acc = acc + jnp.dot(onehot, w_mid_ref[...], preferred_element_type=jnp.float32)
    acc = acc + jnp.dot(onehot, w_lo_ref[...], preferred_element_type=jnp.float32)
    out_ref[...] = acc.astype(out_ref.dtype)


def _onehot_resident_footprint(T, V_pad, E_pad):
    w = 2 * 3 * V_pad * E_pad * 2          # 3 bf16 tables, double-buffered by the pipeline
    out = 2 * T * E_pad * 4                # double-buffered f32 output block
    ids = 2 * T * 128 * 4                  # (T,1) int32 block, lane-padded, double-buffered
    tmp = T * V_pad * 8 + T * E_pad * 4    # iota + bf16 one-hot temps + f32 acc
    return w + out + ids + tmp


def _lookup_onehot(flat_ids, weight, T, N_pad, vmem_limit):
    N = flat_ids.shape[0]
    V, E = weight.shape
    V_pad = _round_up(V, 128)              # MXU K dim / lane-dense one-hot
    E_pad = _round_up(E, 128)
    n_tok = N_pad // T

    w = weight.astype(jnp.float32)
    if (V_pad, E_pad) != (V, E):
        w = jnp.zeros((V_pad, E_pad), jnp.float32).at[:V, :E].set(w)
    w_hi, w_mid, w_lo = _split_f32_to_3bf16(w)
    ids2d = jnp.zeros((N_pad, 1), jnp.int32).at[:N, 0].set(flat_ids)

    w_spec = pl.BlockSpec((V_pad, E_pad), lambda i: (0, 0))    # constant -> DMA'd once
    cost = pl.CostEstimate(
        flops=2 * 3 * N_pad * V_pad * E_pad,
        transcendentals=0,
        bytes_accessed=3 * V_pad * E_pad * 2 + N_pad * 4 + N_pad * E_pad * 4,
    )
    out = pl.pallas_call(
        _onehot_resident_kernel,
        out_shape=jax.ShapeDtypeStruct((N_pad, E_pad), weight.dtype),
        grid_spec=pltpu.PrefetchScalarGridSpec(
            num_scalar_prefetch=0,
            grid=(n_tok,),
            in_specs=[pl.BlockSpec((T, 1), lambda i: (i, 0)), w_spec, w_spec, w_spec],
            out_specs=pl.BlockSpec((T, E_pad), lambda i: (i, 0)),
        ),
        compiler_params=pltpu.CompilerParams(
            dimension_semantics=("parallel",),
            vmem_limit_bytes=vmem_limit,
        ),
        cost_estimate=cost,
    )(ids2d, w_hi, w_mid, w_lo)
    return out[:, :E]  # (N_pad, E)


# ---------------------------------------------------------------------------
# Public wrapper == RandomEmbeddingModel.forward
# ---------------------------------------------------------------------------
def embedding_lookup(input_ids, weight, *, token_block=256, method="auto",
                     onehot_max_vocab=1024):
    """weight[input_ids].  method: "auto" | "gather" | "onehot".

    Out-of-range ids are clamped to [0, V-1] (torch.nn.Embedding raises).
    """
    orig_shape = input_ids.shape
    V, E = weight.shape

    flat = jnp.clip(input_ids.reshape(-1).astype(jnp.int32), 0, V - 1)
    N = int(flat.shape[0])
    if N == 0:
        return jnp.zeros((*orig_shape, E), weight.dtype)

    # Token-block size: multiple of 8, and >= 2 blocks so both v7x TensorCores
    # get work on the "parallel" token axis.
    T = max(8, _round_up(min(token_block, N), 8))
    if N > 8 and _round_up(N, T) // T < 2:
        T = max(8, _round_up((N + 1) // 2, 8))
    N_pad = _round_up(N, T)

    phys_vmem = _vmem_capacity_bytes()
    # ~56 MiB on v7x (64 MiB physical), ~100 MiB on v5e/v6e (128 MiB physical).
    vmem_limit = int(min(phys_vmem - 8 * _MIB, 100 * _MIB))

    if method == "auto":
        V_pad = _round_up(V, 128)
        E_pad = _round_up(E, 128)
        fits = _onehot_resident_footprint(T, V_pad, E_pad) + 4 * _MIB <= vmem_limit
        use_onehot = (weight.dtype == jnp.float32
                      and V_pad <= onehot_max_vocab and fits)
    elif method == "onehot":
        use_onehot = True
    elif method == "gather":
        use_onehot = False
    else:
        raise ValueError(f"unknown method: {method!r}")

    if use_onehot:
        out = _lookup_onehot(flat, weight, T, N_pad, vmem_limit)
    else:
        out = _lookup_gather(flat, weight, T, N_pad, vmem_limit)

    return out[:N].reshape(*orig_shape, E)


def init_embedding_params(key, vocab_size, embedding_size, padding_idx=0):
    """nn.Embedding-style init: N(0,1) with the padding row zeroed."""
    w = jax.random.normal(key, (vocab_size, embedding_size), dtype=jnp.float32)
    return w.at[padding_idx].set(0.0)


if __name__ == "__main__":
    # Small shapes consistent with the module (vocab x embed table, integer ids).
    VOCAB = 512
    EMBED = 256          # lane-aligned
    BATCH, SEQ = 2, 100  # N=200 -> partial last block + the >=2-block logic

    key = jax.random.PRNGKey(0)
    k_w, k_ids = jax.random.split(key)

    weight = init_embedding_params(k_w, VOCAB, EMBED, padding_idx=0)
    input_text = jax.random.randint(k_ids, (BATCH, SEQ), 0, VOCAB, dtype=jnp.int32)
    input_text = input_text.at[0, 0].set(0)   # include a padding (0) token

    ref = jnp.take(weight, input_text, axis=0)   # == torch Embedding forward

    # auto -> resident one-hot path (small vocab fits VMEM).
    out_resident = jax.block_until_ready(embedding_lookup(input_text, weight))
    # forced HBM row-DMA gather path (the large-vocab path), for coverage.
    out_gather = jax.block_until_ready(
        embedding_lookup(input_text, weight, method="gather"))

    for out in (out_resident, out_gather):
        assert out.shape == (BATCH, SEQ, EMBED), out.shape
        assert out.dtype == jnp.float32, out.dtype
        err = float(jnp.max(jnp.abs(out - ref)))
        assert jnp.allclose(out, ref, rtol=1e-5, atol=1e-5), err
        assert bool(jnp.all(out[0, 0] == 0.0))   # padding_idx row exactly zero

    print("KERNEL_OK")
</pallas_src>

<mosaic_0001>
module attributes {stable_mosaic.version = 11 : i64} {
  func.func @_onehot_resident_kernel(%arg0: i32, %arg1: memref<104x1xi32, #tpu.memory_space<vmem>>, %arg2: memref<512x256xbf16, #tpu.memory_space<vmem>>, %arg3: memref<512x256xbf16, #tpu.memory_space<vmem>>, %arg4: memref<512x256xbf16, #tpu.memory_space<vmem>>, %arg5: memref<104x256xf32, #tpu.memory_space<vmem>>) attributes {dimension_semantics = [#tpu.dimension_semantics<parallel>], iteration_bounds = array<i64: 2>, scalar_prefetch = 0 : i64, scratch_operands = 0 : i64, tpu.core_type = #tpu.core_type<tc>, window_params = [{transform_indices = @transform_0, window_bounds = array<i64: 104, 1>}, {pipeline_mode = #tpu.pipeline_mode<synchronous>, transform_indices = @transform_1, window_bounds = array<i64: 512, 256>}, {pipeline_mode = #tpu.pipeline_mode<synchronous>, transform_indices = @transform_2, window_bounds = array<i64: 512, 256>}, {pipeline_mode = #tpu.pipeline_mode<synchronous>, transform_indices = @transform_3, window_bounds = array<i64: 512, 256>}, {transform_indices = @transform_4, window_bounds = array<i64: 104, 256>}]} {
    %c0 = arith.constant 0 : index
    %c0_0 = arith.constant 0 : index
    %0 = vector.load %arg1[%c0, %c0_0] : memref<104x1xi32, #tpu.memory_space<vmem>>, vector<104x1xi32>
    %1 = tpu.iota {dimensions = array<i32: 1>} : vector<104x512xi32>
    %2 = vector.broadcast %0 : vector<104x1xi32> to vector<104x512xi32>
    %3 = arith.cmpi eq, %2, %1 : vector<104x512xi32>
    %4 = arith.extui %3 : vector<104x512xi1> to vector<104x512xi32>
    %5 = arith.sitofp %4 : vector<104x512xi32> to vector<104x512xf32>
    %6 = arith.truncf %5 : vector<104x512xf32> to vector<104x512xbf16>
    %c0_1 = arith.constant 0 : index
    %c0_2 = arith.constant 0 : index
    %7 = vector.load %arg2[%c0_1, %c0_2] : memref<512x256xbf16, #tpu.memory_space<vmem>>, vector<512x256xbf16>
    %cst = arith.constant dense<0.000000e+00> : vector<104x256xf32>
    %8 = tpu.matmul %6, %7, %cst {dimension_numbers = #tpu.dot_dimension_numbers<[1], [0], [0], [1], [0, 0, 1, 1], [], []>} : vector<104x512xbf16>, vector<512x256xbf16>, vector<104x256xf32> -> vector<104x256xf32>
    %c0_3 = arith.constant 0 : index
    %c0_4 = arith.constant 0 : index
    %9 = vector.load %arg3[%c0_3, %c0_4] : memref<512x256xbf16, #tpu.memory_space<vmem>>, vector<512x256xbf16>
    %cst_5 = arith.constant dense<0.000000e+00> : vector<104x256xf32>
    %10 = tpu.matmul %6, %9, %cst_5 {dimension_numbers = #tpu.dot_dimension_numbers<[1], [0], [0], [1], [0, 0, 1, 1], [], []>} : vector<104x512xbf16>, vector<512x256xbf16>, vector<104x256xf32> -> vector<104x256xf32>
    %11 = arith.addf %8, %10 : vector<104x256xf32>
    %c0_6 = arith.constant 0 : index
    %c0_7 = arith.constant 0 : index
    %12 = vector.load %arg4[%c0_6, %c0_7] : memref<512x256xbf16, #tpu.memory_space<vmem>>, vector<512x256xbf16>
    %cst_8 = arith.constant dense<0.000000e+00> : vector<104x256xf32>
    %13 = tpu.matmul %6, %12, %cst_8 {dimension_numbers = #tpu.dot_dimension_numbers<[1], [0], [0], [1], [0, 0, 1, 1], [], []>} : vector<104x512xbf16>, vector<512x256xbf16>, vector<104x256xf32> -> vector<104x256xf32>
    %14 = arith.addf %11, %13 : vector<104x256xf32>
    %c0_9 = arith.constant 0 : index
    %c0_10 = arith.constant 0 : index
    %15 = vector.load %arg5[%c0_9, %c0_10] : memref<104x256xf32, #tpu.memory_space<vmem>>, vector<104x256xf32>
    tpu.vector_store %arg5[%c0_9, %c0_10], %14 {strides = array<i32>} : memref<104x256xf32, #tpu.memory_space<vmem>>, vector<104x256xf32>,
    return
  }
  func.func @transform_0(%arg0: i32) -> (i32, i32) {
    %c0_i32 = arith.constant 0 : i32
    %c0_i32_0 = arith.constant 0 : i32
    return %arg0, %c0_i32 : i32, i32
  }
  func.func @transform_1(%arg0: i32) -> (i32, i32) {
    %c0_i32 = arith.constant 0 : i32
    %c0_i32_0 = arith.constant 0 : i32
    %c0_i32_1 = arith.constant 0 : i32
    return %c0_i32, %c0_i32_0 : i32, i32
  }
  func.func @transform_2(%arg0: i32) -> (i32, i32) {
    %c0_i32 = arith.constant 0 : i32
    %c0_i32_0 = arith.constant 0 : i32
    %c0_i32_1 = arith.constant 0 : i32
    return %c0_i32, %c0_i32_0 : i32, i32
  }
  func.func @transform_3(%arg0: i32) -> (i32, i32) {
    %c0_i32 = arith.constant 0 : i32
    %c0_i32_0 = arith.constant 0 : i32
    %c0_i32_1 = arith.constant 0 : i32
    return %c0_i32, %c0_i32_0 : i32, i32
  }
  func.func @transform_4(%arg0: i32) -> (i32, i32) {
    %c0_i32 = arith.constant 0 : i32
    %c0_i32_0 = arith.constant 0 : i32
    return %arg0, %c0_i32 : i32, i32
  }
}

</mosaic_0001>

<bundles_post_ra>
// kernel: tpu_custom_call.1
= control target key start
LH: loop header
LB: loop body
LE: loop exit
PB: predicated region body
PF: predicated region fallthrough
CT: control target
= control target key end

     0   :  { %9 = vsyncpa [#allocation3], 0  ;;  %s4167_s0 = inlined_call_operand.vmem [shape: s32[208,1], index: 0, kind: input, shape index: {}]   ;;  %s4168_s1 = inlined_call_operand.hbm [shape: bf16[512,256], index: 1, kind: input, shape index: {}]   ;;  %s4169_s2 = inlined_call_operand.hbm [shape: bf16[512,256], index: 2, kind: input, shape index: {}]   ;;  %s4170_s3 = inlined_call_operand.hbm [shape: bf16[512,256], index: 3, kind: input, shape index: {}]   ;;  %s4171_s4 = inlined_call_operand.hbm [shape: f32[208,256], index: 4, kind: output, shape index: {}]  }
   0x1   :  { %10 = vsyncpa [#allocation6], 0 }
   0x2   :  { %11 = vsyncpa [#allocation4], 0 }
   0x3   :  { %13 = vsyncpa [#allocation4 + $0x1], 0  ;;  %s3382_s15 = smov 0   ;;  %s3384_s16 = smov 0  }
   0x4   :  { %s3386_s17 = smov 0   ;;  %s3388_s18 = smov 0  }
   0x5 LB: > { %s3403_s19 = sadd.s32 4294967295, %s3345_s18   ;;  %s2402_s20 = sadd.s32 4294967294, %s3345_s18   ;;  %s3345_s18 = sphi %s3388_s18, %s4305_s18   ;;  %s3341_s17 = sphi %s3386_s17, %s4304_s17   ;;  %s3337_s16 = sphi %s3384_s16, %s4303_s16   ;;  %s3333_s15 = sphi %s3382_s15, %s4302_s15  }
   0x6   : > { %s3407_s21 = sadd.s32 1, %s3345_s18   ;;  %s115_s22 = sadd.s32 1, %s3341_s17 }
   0x7   : > { %s112_s23 = ssub.s32 %s3345_s18, %s3407_s21  ;;  %p125_p0 = scmp.ne.s32.totalorder %s3341_s17, %s3337_s16 }
   0x8   : > { %p113_p1 = scmp.eq.s32.totalorder %s112_s23, 0  ;;  %p126_p2 = scmp.eq.s32.totalorder %s3403_s19, 1 }
   0x9   : > { %p131_p3 = scmp.ne.s32.totalorder %s3337_s16, %s3333_s15  ;;  %p132_p4 = scmp.eq.s32.totalorder %s2402_s20, 1 }
   0xa   : > { %s3418_s24 = scalar_select %p113_p1, %s3341_s17, %s115_s22  }
   0xb   : > { %p3420_p5 = por %p126_p2, %p125_p0  ;;  %p3424_p6 = por %p132_p4, %p131_p3 }
   0xc   : > { %p2403_p7 = scmp.ge.s32.totalorder %s3345_s18, 1  ;;  %p139_p8 = scmp.lt.s32.totalorder %s3345_s18, 3 }
   0xd   : > { %s4207_s25 = scalar_select %p3420_p5, 1, 0 }
   0xe   : > { %s4208_s26 = scalar_select %p3424_p6, 1, 0 }
   0xf   : > { %p4172_p9 = scmp.eq.s32.totalorder %s3403_s19, 0  ;;  %p3431_p10 = pnand %p2403_p7, %p139_p8 }
  0x10   : > { %s3347_s28 = smov [#allocation5]   ;;  %s3348_s5 = smov [#allocation2]  }
  0x11   : > { %p2847_p11 = pneg %p3431_p10  ;;  %s164_s29 = sshll.u32 %s3347_s28, 4  ;;  %s165_s29 = int_to_ptr.vmem [resolvable:$true] %s164_s29 }
  0x12   : > { %s151_s6 = sshll.u32 %s3348_s5, 4  ;;  %s3349_s7 = smov [#allocation7]   ;;  %s152_s6 = int_to_ptr.vmem [resolvable:$true] %s151_s6 }
  0x13   : > { %p3439_p12 = pnand %p4172_p9, %p2847_p11  ;;  %s177_s8 = sshll.u32 %s3349_s7, 4  ;;  %s178_s8 = int_to_ptr.vmem [resolvable:$true] %s177_s8 }
  0x14   : > { %s3210_s9 = scalar_lea.vmem %s165_s29, 8192  ;;  %p3218_p3 = scmp.lt.s32.totalorder %s165_s29, %s165_s29 }
  0x15   : > { %p3201_p13 = pneg %p3439_p12  ;;  %p3211_p0 = scmp.ne.s32.totalorder %s165_s29, %s3210_s9 }
  0x16   : > { %p3219_p4 = scmp.lt.s32.totalorder %s3210_s9, %s3210_s9 }
  0x17   : > { %p3213_p1 = pnand %p3211_p0, %p3201_p13 }
  0x18   : > { %p3220_p7 = por %p3219_p4, %p3218_p3 }
  0x19   : > { %p3214_p2 = pneg %p3213_p1 }
  0x1b   : > { %p3221_p8 = pnand %p3220_p7, %p3214_p2 }
  0x1d   : > { %3224 = shalt.err (!%p3221_p8)
}
  0x1e   : > { %s3350_s10 = smov 128   ;;  %s3351_s11 = smov 8  }
  0x1f   : > { %2853 = dma.hbm_to_vmem [thread:$0]  (!%p3439_p12), %s4169_s2, 8192, %s165_s29, [#allocation6], %s3350_s10, %s3350_s10, %s3351_s11  }
  0x20   : > { %s3236_s14 = scalar_lea.vmem %s152_s6, 8192  ;;  %p3244_p9 = scmp.lt.s32.totalorder %s152_s6, %s152_s6 }
  0x21   : > { %p3237_p11 = scmp.ne.s32.totalorder %s152_s6, %s3236_s14  ;;  %p3245_p6 = scmp.lt.s32.totalorder %s3236_s14, %s3236_s14 }
  0x23   : > { %p3239_p0 = pnand %p3237_p11, %p3201_p13  ;;  %p3246_p3 = por %p3245_p6, %p3244_p9 }
  0x25   : > { %p3240_p1 = pneg %p3239_p0 }
  0x27   : > { %p3247_p2 = pnand %p3246_p3, %p3240_p1 }
  0x29   : > { %3250 = shalt.err (!%p3247_p2)
}
  0x2a   : > { %2850 = dma.hbm_to_vmem [thread:$0]  (!%p3439_p12), %s4168_s1, 8192, %s152_s6, [#allocation3], %s3350_s10, %s3350_s10, %s3351_s11  }
  0x2b   : > { %s3262_s23 = scalar_lea.vmem %s178_s8, 8192  ;;  %p3270_p11 = scmp.lt.s32.totalorder %s178_s8, %s178_s8 }
  0x2c   : > { %p3263_p4 = scmp.ne.s32.totalorder %s178_s8, %s3262_s23  ;;  %p3271_p0 = scmp.lt.s32.totalorder %s3262_s23, %s3262_s23 }
  0x2e   : > { %p3265_p7 = pnand %p3263_p4, %p3201_p13  ;;  %p3272_p5 = por %p3271_p0, %p3270_p11 }
  0x30   : > { %p3266_p8 = pneg %p3265_p7 }
  0x32   : > { %p3273_p6 = pnand %p3272_p5, %p3266_p8 }
  0x34   : > { %3276 = shalt.err (!%p3273_p6)
}
  0x35   : > { %2856 = dma.hbm_to_vmem [thread:$0]  (!%p3439_p12), %s4170_s3, 8192, %s178_s8, [#allocation6], %s3350_s10, %s3350_s10, %s3351_s11  }
  0x36   : > { %202 = sbr.rel (%p3431_p10) target bundleno = 594 (0x252), region = 36  ;;  %p4211_p9 = scmp.eq.s32.totalorder (!%p3431_p10), %s3403_s19, 0 }
  0x3b   : > { %3320 = dma.done.wait (%p4211_p9), [#allocation3], 8192   ;;  %p4212_p13 = pmov %p4211_p9 }
  0x3c   : > { %p4213_p1 = pmov %p4211_p9 }
  0x3d   : > { %3322 = vsyncadd (%p4212_p13), [#allocation3], 4294959104 }
  0x3e   : > { %3324 = dma.done.wait (%p4213_p1), [#allocation6], 16384   ;;  %p4214_p5 = pmov %p4213_p1 }
  0x3f   : > { %s236_s30 = smul.u32 13, %s3403_s19  ;;  %v3352_v0 = vmov 0   ;;  %v2911_v1 = vld [vmem:[#allocation5 + $0x74] ss:$8 sps:$4 sm:$0xff]   ;;  %v2915_v9 = vld [vmem:[#allocation5 + $0x70] ss:$8 sps:$4 sm:$0xff]  }
  0x40   : > { %3326 = vsyncadd (%p4214_p5), [#allocation6], 4294950912  ;;  %2910 = vset.pattern.permute.xlu1 %v3352_v0  ;;  %2909 = vset.pattern.permute.xlu0 %v3352_v0  ;;  %v2913_v8 = vld [vmem:[#allocation5 + $0x174] ss:$8 sps:$4 sm:$0xff]   ;;  %v2916_v10 = vld [vmem:[#allocation5 + $0x170] ss:$8 sps:$4 sm:$0xff]  }
  0x41   : > { %p237_p12 = scmp.lt.s32.totalorder %s236_s30, 25  ;;  %932 = vmatprep.subr.bf16.mxu0 %v2911_v1  ;;  %v2917_v11 = vld [vmem:[#allocation5 + $0x64] ss:$8 sps:$4 sm:$0xff]   ;;  %1033 = vmatprep.subr.bf16.mxu1 %v2913_v8  ;;  %v2921_v15 = vld [vmem:[#allocation5 + $0x60] ss:$8 sps:$4 sm:$0xff]   ;;  %s233_s8 = sand.u32 1, %s3337_s16  }
  0x42   : > { %933 = vmatpush1.bf16.msra.mxu0 %v2915_v9  ;;  %v2919_v12 = vld [vmem:[#allocation5 + $0x164] ss:$8 sps:$4 sm:$0xff]   ;;  %1034 = vmatpush1.bf16.msra.mxu1 %v2916_v10  ;;  %v2922_v16 = vld [vmem:[#allocation5 + $0x160] ss:$8 sps:$4 sm:$0xff]   ;;  %v2923_v17 = vld [vmem:[#allocation5 + $0x54] ss:$8 sps:$4 sm:$0xff]  }
  0x43   : > { %s4307_s30 = smov (!%p237_p12, %s236_s30), 25  ;;  %934 = vmatprep.subr.bf16.mxu0 %v2917_v11  ;;  %1035 = vmatprep.subr.bf16.mxu1 %v2919_v12  ;;  %v2925_v18 = vld [vmem:[#allocation5 + $0x154] ss:$8 sps:$4 sm:$0xff]   ;;  %v2927_v19 = vld [vmem:[#allocation5 + $0x50] ss:$8 sps:$4 sm:$0xff]   ;;  %s2832_s9 = smul.u32 208, %s233_s8 }
  0x44   : > { %s2412_s27 = sshll.u32 %s4307_s30, 3  ;;  %v2928_v20 = vld [vmem:[#allocation5 + $0x150] ss:$8 sps:$4 sm:$0xff]   ;;  %v2929_v21 = vld [vmem:[#allocation5 + $0x44] ss:$8 sps:$4 sm:$0xff]   ;;  %s2831_s11 = smul.u32 3328, %s3403_s19 }
  0x45   : > { %s3483_s7 = scalar_lea.vmem %s4167_s0, %s2412_s27  ;;  %v2931_v24 = vld [vmem:[#allocation5 + $0x144] ss:$8 sps:$4 sm:$0xff]   ;;  %v2933_v25 = vld [vmem:[#allocation5 + $0x40] ss:$8 sps:$4 sm:$0xff]   ;;  %v2935_v28 = vld [vmem:[#allocation5 + $0x34] ss:$8 sps:$4 sm:$0xff]  }
  0x46   : > { %v245_v2 = vld [vmem:[%s3483_s7 + $0x10] sm:$0xff]  ;;  %v243_v3 = vld [vmem:[%s3483_s7] sm:$0xff]  ;;  %v246_v4 = vld [vmem:[%s3483_s7 + $0x18] sm:$0xff]  ;;  %935 = vmatpush1.bf16.msra.mxu0 %v2921_v15  ;;  %1036 = vmatpush1.bf16.msra.mxu1 %v2922_v16  ;;  %v256_v16 = vlaneseq  ;;  %s4063_s10 = scalar_lea.vmem [#allocation8], %s2832_s9  ;;  %s4122_s14 = scalar_lea.hbm %s4171_s4, %s2831_s11 }
  0x47   : > { %268 = vperm.xlu1 %2910, %v245_v2   ;;  %262 = vperm.xlu0 %2909, %v243_v3   ;;  %v244_v5 = vld [vmem:[%s3483_s7 + $0x8] sm:$0xff]  ;;  %v247_v7 = vld [vmem:[%s3483_s7 + $0x20] sm:$0xff]  ;;  %v250_v13 = vld [vmem:[%s3483_s7 + $0x38] sm:$0xff]  ;;  %s2309_s12 = sshll.u32 %s4063_s10, 4  ;;  %s4127_s20 = scalar_lea.sflag [#allocation4], %s233_s8  ;;  %s4115_s12 = int_to_ptr.vmem [resolvable:$true] %s2309_s12 }
  0x48   : > { %v248_v6 = vld [vmem:[%s3483_s7 + $0x28] sm:$0xff]  ;;  %v249_v14 = vld [vmem:[%s3483_s7 + $0x30] sm:$0xff]  ;;  %936 = vmatprep.subr.bf16.mxu0 %v2923_v17  ;;  %v251_v23 = vld [vmem:[%s3483_s7 + $0x40] sm:$0xff]  ;;  %1037 = vmatprep.subr.bf16.mxu1 %v2925_v18  ;;  %v3498_v17 = vand.u32 127, %v256_v16  ;;  %s3277_s22 = scalar_lea.vmem %s4115_s12, 3328  ;;  %p4300_p3 = scmp.ne.s32.totalorder %s4207_s25, 0 }
  0x49   : > { %v252_v22 = vld [vmem:[%s3483_s7 + $0x48] sm:$0xff]  ;;  %v254_v26 = vld [vmem:[%s3483_s7 + $0x58] sm:$0xff]  ;;  %v253_v29 = vld [vmem:[%s3483_s7 + $0x50] sm:$0xff]  ;;  %p3278_p10 = scmp.ne.s32.totalorder %s4115_s12, %s3277_s22  ;;  %s3354_s23 = smov [#allocation8]  }
  0x4a   : > { %937 = vmatpush1.bf16.msra.mxu0 %v2927_v19  ;;  %1038 = vmatpush1.bf16.msra.mxu1 %v2928_v20  ;;  %v2934_v27 = vld [vmem:[#allocation5 + $0x140] ss:$8 sps:$4 sm:$0xff]   ;;  %v2937_v30 = vld [vmem:[#allocation5 + $0x134] ss:$8 sps:$4 sm:$0xff]   ;;  %v2939_v31 = vld [vmem:[#allocation5 + $0x30] ss:$8 sps:$4 sm:$0xff]  }
  0x4b   : > { %271 = vperm.xlu1 %2910, %v246_v4   ;;  %265 = vperm.xlu0 %2909, %v244_v5   ;;  %v2940_v32 = vld [vmem:[#allocation5 + $0x130] ss:$8 sps:$4 sm:$0xff]   ;;  %v2941_v33 = vld [vmem:[#allocation5 + $0x24] ss:$8 sps:$4 sm:$0xff]   ;;  %v2945_v36 = vld [vmem:[#allocation5 + $0x20] ss:$8 sps:$4 sm:$0xff]   ;;  %p3279_p2 = pnand %p3278_p10, %p4300_p3 }
  0x4c   : > { %938 = vmatprep.subr.bf16.mxu0 %v2929_v21  ;;  %1039 = vmatprep.subr.bf16.mxu1 %v2931_v24  ;;  %v2943_v34 = vld [vmem:[#allocation5 + $0x124] ss:$8 sps:$4 sm:$0xff]   ;;  %v2946_v37 = vld [vmem:[#allocation5 + $0x120] ss:$8 sps:$4 sm:$0xff]   ;;  %v2947_v38 = vld [vmem:[#allocation5 + $0x14] ss:$8 sps:$4 sm:$0xff]  }
  0x4d   : > { %v255_v35 = vld [vmem:[%s3483_s7 + $0x60] sm:$0xff]  ;;  %v2949_v39 = vld [vmem:[#allocation5 + $0x114] ss:$8 sps:$4 sm:$0xff]   ;;  %v2951_v40 = vld [vmem:[#allocation5 + $0x10] ss:$8 sps:$4 sm:$0xff]   ;;  %v3501_v20 = vadd.s32 128, %v3498_v17  ;;  %p3280_p4 = pneg %p3279_p2 }
  0x4e   : > { %939 = vmatpush1.bf16.msra.mxu0 %v2933_v25  ;;  %1040 = vmatpush1.bf16.msra.mxu1 %v2934_v27  ;;  %v2952_v41 = vld [vmem:[#allocation5 + $0x110] ss:$8 sps:$4 sm:$0xff]   ;;  %v2953_v42 = vld [vmem:[#allocation5 + $0x4] ss:$8 sps:$4 sm:$0xff]   ;;  %v2957_v44 = vld [vmem:[#allocation5] ss:$8 sps:$4 sm:$0xff]  }
  0x4f   : > { %277 = vperm.xlu1 %2910, %v248_v6   ;;  %274 = vperm.xlu0 %2909, %v247_v7   ;;  %v2955_v43 = vld [vmem:[#allocation5 + $0x104] ss:$8 sps:$4 sm:$0xff]   ;;  %v2958_v45 = vld [vmem:[#allocation5 + $0x100] ss:$8 sps:$4 sm:$0xff]   ;;  %v2959_v46 = vld [vmem:[#allocation5 + $0xf4] ss:$8 sps:$4 sm:$0xff]  }
  0x50   : > { %940 = vmatprep.subr.bf16.mxu0 %v2935_v28  ;;  %1041 = vmatprep.subr.bf16.mxu1 %v2937_v30  ;;  %v2961_v47 = vld [vmem:[#allocation5 + $0x1f4] ss:$8 sps:$4 sm:$0xff]   ;;  %v2963_v48 = vld [vmem:[#allocation5 + $0xf0] ss:$8 sps:$4 sm:$0xff]   ;;  %v2965_v50 = vld [vmem:[#allocation5 + $0xe4] ss:$8 sps:$4 sm:$0xff]  }
  0x51   : > { %v2964_v49 = vld [vmem:[#allocation5 + $0x1f0] ss:$8 sps:$4 sm:$0xff]   ;;  %v2967_v51 = vld [vmem:[#allocation5 + $0x1e4] ss:$8 sps:$4 sm:$0xff]   ;;  %v2969_v52 = vld [vmem:[#allocation5 + $0xe0] ss:$8 sps:$4 sm:$0xff]  }
  0x52   : > { %941 = vmatpush1.bf16.msra.mxu0 %v2939_v31  ;;  %1042 = vmatpush1.bf16.msra.mxu1 %v2940_v32  ;;  %v2970_v53 = vld [vmem:[#allocation5 + $0x1e0] ss:$8 sps:$4 sm:$0xff]   ;;  %v2971_v54 = vld [vmem:[#allocation5 + $0xd4] ss:$8 sps:$4 sm:$0xff]   ;;  %v2975_v56 = vld [vmem:[#allocation5 + $0xd0] ss:$8 sps:$4 sm:$0xff]  }
  0x53   : > { %283 = vperm.xlu1 %2910, %v250_v13   ;;  %280 = vperm.xlu0 %2909, %v249_v14   ;;  %v2973_v55 = vld [vmem:[#allocation5 + $0x1d4] ss:$8 sps:$4 sm:$0xff]   ;;  %v2976_v57 = vld [vmem:[#allocation5 + $0x1d0] ss:$8 sps:$4 sm:$0xff]   ;;  %v2977_v58 = vld [vmem:[#allocation5 + $0xc4] ss:$8 sps:$4 sm:$0xff]  }
  0x54   : > { %942 = vmatprep.subr.bf16.mxu0 %v2941_v33  ;;  %1043 = vmatprep.subr.bf16.mxu1 %v2943_v34  ;;  %v2979_v59 = vld [vmem:[#allocation5 + $0x1c4] ss:$8 sps:$4 sm:$0xff]   ;;  %v2981_v60 = vld [vmem:[#allocation5 + $0xc0] ss:$8 sps:$4 sm:$0xff]   ;;  %v2983_v62 = vld [vmem:[#allocation5 + $0xb4] ss:$8 sps:$4 sm:$0xff]  }
  0x55   : > { %v2982_v61 = vld [vmem:[#allocation5 + $0x1c0] ss:$8 sps:$4 sm:$0xff]   ;;  %v2985_v63 = vld [vmem:[#allocation5 + $0x1b4] ss:$8 sps:$4 sm:$0xff]   ;;  %v2987_v0 = vld [vmem:[#allocation5 + $0xb0] ss:$8 sps:$4 sm:$0xff]  }
  0x56   : > { %943 = vmatpush1.bf16.msra.mxu0 %v2945_v36  ;;  %1044 = vmatpush1.bf16.msra.mxu1 %v2946_v37  ;;  %v2988_v1 = vld [vmem:[#allocation5 + $0x1b0] ss:$8 sps:$4 sm:$0xff]   ;;  %v2989_v2 = vld [vmem:[#allocation5 + $0xa4] ss:$8 sps:$4 sm:$0xff]   ;;  %v2993_v4 = vld [vmem:[#allocation5 + $0xa0] ss:$8 sps:$4 sm:$0xff]  }
  0x57   : > { %289 = vperm.xlu1 %2910, %v252_v22   ;;  %286 = vperm.xlu0 %2909, %v251_v23   ;;  %v2991_v3 = vld [vmem:[#allocation5 + $0x1a4] ss:$8 sps:$4 sm:$0xff]   ;;  %v2994_v5 = vld [vmem:[#allocation5 + $0x1a0] ss:$8 sps:$4 sm:$0xff]   ;;  %v2995_v6 = vld [vmem:[#allocation5 + $0x94] ss:$8 sps:$4 sm:$0xff]  }
  0x58   : > { %944 = vmatprep.subr.bf16.mxu0 %v2947_v38  ;;  %1045 = vmatprep.subr.bf16.mxu1 %v2949_v39  ;;  %v2997_v7 = vld [vmem:[#allocation5 + $0x194] ss:$8 sps:$4 sm:$0xff]   ;;  %v2999_v8 = vld [vmem:[#allocation5 + $0x90] ss:$8 sps:$4 sm:$0xff]   ;;  %v3001_v10 = vld [vmem:[#allocation5 + $0x84] ss:$8 sps:$4 sm:$0xff]  }
  0x59   : > { %v3000_v9 = vld [vmem:[#allocation5 + $0x190] ss:$8 sps:$4 sm:$0xff]   ;;  %v3003_v11 = vld [vmem:[#allocation5 + $0x184] ss:$8 sps:$4 sm:$0xff]   ;;  %v3005_v12 = vld [vmem:[#allocation5 + $0x80] ss:$8 sps:$4 sm:$0xff]  }
  0x5a   : > { %945 = vmatpush1.bf16.msra.mxu0 %v2951_v40  ;;  %1046 = vmatpush1.bf16.msra.mxu1 %v2952_v41  ;;  %v3006_v13 = vld [vmem:[#allocation5 + $0x180] ss:$8 sps:$4 sm:$0xff]   ;;  %v3009_v14 = vld [vmem:[#allocation2 + $0x74] ss:$8 sps:$4 sm:$0xff]   ;;  %v3504_v21 = vadd.s32 384, %v3498_v17  ;;  %v3507_v23 = vadd.s32 256, %v3498_v17 }
  0x5b   : > { %295 = vperm.xlu1 %2910, %v254_v26   ;;  %292 = vperm.xlu0 %2909, %v253_v29   ;;  %v3012_v15 = vld [vmem:[#allocation2 + $0x174] ss:$8 sps:$4 sm:$0xff]   ;;  %v3007_v24 = vld [vmem:[#allocation2 + $0x70] ss:$8 sps:$4 sm:$0xff]   ;;  %v3353_v27 = vmov 1.0|1.0  }
  0x5c   : > { %946 = vmatprep.subr.bf16.mxu0 %v2953_v42  ;;  %1047 = vmatprep.subr.bf16.mxu1 %v2955_v43  ;;  %v3010_v29 = vld [vmem:[#allocation2 + $0x170] ss:$8 sps:$4 sm:$0xff]   ;;  %v3015_v30 = vld [vmem:[#allocation2 + $0x64] ss:$8 sps:$4 sm:$0xff]   ;;  %v3013_v34 = vld [vmem:[#allocation2 + $0x60] ss:$8 sps:$4 sm:$0xff]  }
  0x5d   : > { %v3018_v32 = vld [vmem:[#allocation2 + $0x164] ss:$8 sps:$4 sm:$0xff]   ;;  %v3016_v36 = vld [vmem:[#allocation2 + $0x160] ss:$8 sps:$4 sm:$0xff]   ;;  %v4225_v37 = vmov 0  ;;  %v4227_v43 = vmov 0 }
  0x5e   : > { %947 = vmatpush1.bf16.msra.mxu0 %v2957_v44  ;;  %1048 = vmatpush1.bf16.msra.mxu1 %v2958_v45  ;;  %v3021_v38 = vld [vmem:[#allocation2 + $0x54] ss:$8 sps:$4 sm:$0xff]   ;;  %v3019_v42 = vld [vmem:[#allocation2 + $0x50] ss:$8 sps:$4 sm:$0xff]   ;;  %v4229_v45 = vmov 0  ;;  %s3281_s28 = sshll.u32 %s3354_s23, 4  ;;  %s3282_s28 = int_to_ptr.vmem [resolvable:$false] %s3281_s28 }
  0x5f   : > { %298 = vperm.xlu0 %2909, %v255_v35   ;;  %948 = vmatprep.subr.bf16.mxu0 %v2959_v46  ;;  %v3024_v41 = vld [vmem:[#allocation2 + $0x154] ss:$8 sps:$4 sm:$0xff]   ;;  %v3022_v44 = vld [vmem:[#allocation2 + $0x150] ss:$8 sps:$4 sm:$0xff]   ;;  %v3027_v46 = vld [vmem:[#allocation2 + $0x44] ss:$8 sps:$4 sm:$0xff]   ;;  %p3284_p7 = scmp.lt.s32.totalorder %s4115_s12, %s3282_s28 }
  0x60   : > { %1049 = vmatprep.subr.bf16.mxu1 %v2961_v47  ;;  %v3030_v47 = vld [vmem:[#allocation2 + $0x144] ss:$8 sps:$4 sm:$0xff]   ;;  %v3057_v16 = vld [vmem:[#allocation2 + $0xf4] ss:$8 sps:$4 sm:$0xff]   ;;  %v3196_v28 = vld [vmem:[#allocation7 + $0x180] ss:$8 sps:$4 sm:$0xff]  }
  0x61   : > { %v3198_v26 = vld [vmem:[#allocation7 + $0x184] ss:$8 sps:$4 sm:$0xff]   ;;  %s3283_s29 = scalar_lea.vmem %s3282_s28, 6656 }
  0x62   : > { %949 = vmatpush2.bf16.msra.mxu0 %v2963_v48  ;;  %1050 = vmatpush2.bf16.msra.mxu1 %v2964_v49  ;;  %v4231_v48 = vmov 0  ;;  %v3025_v49 = vld [vmem:[#allocation2 + $0x40] ss:$8 sps:$4 sm:$0xff]   ;;  %p3285_p8 = scmp.lt.s32.totalorder %s3283_s29, %s3277_s22 }
  0x63   : > { %950 = vmatprep.subr.bf16.mxu0 %v2965_v50  ;;  %1051 = vmatprep.subr.bf16.mxu1 %v2967_v51  ;;  %v4233_v50 = vmov 0  ;;  %v3028_v51 = vld [vmem:[#allocation2 + $0x140] ss:$8 sps:$4 sm:$0xff]  }
  0x64   : > { %p3286_p11 = por %p3285_p8, %p3284_p7 }
  0x66   : > { %951 = vmatpush2.bf16.msra.mxu0 %v2969_v52  ;;  %1052 = vmatpush2.bf16.msra.mxu1 %v2970_v53  ;;  %v3033_v52 = vld [vmem:[#allocation2 + $0x34] ss:$8 sps:$4 sm:$0xff]   ;;  %p3287_p0 = pnand %p3286_p11, %p3280_p4 }
  0x67   : > { %952 = vmatprep.subr.bf16.mxu0 %v2971_v54  ;;  %1053 = vmatprep.subr.bf16.mxu1 %v2973_v55  ;;  %v3036_v55 = vld [vmem:[#allocation2 + $0x134] ss:$8 sps:$4 sm:$0xff]  }
  0x6a   : > { %953 = vmatpush2.bf16.msra.mxu0 %v2975_v56  ;;  %1054 = vmatpush2.bf16.msra.mxu1 %v2976_v57  ;;  %v3031_v56 = vld [vmem:[#allocation2 + $0x30] ss:$8 sps:$4 sm:$0xff]  }
  0x6b   : > { %954 = vmatprep.subr.bf16.mxu0 %v2977_v58  ;;  %1055 = vmatprep.subr.bf16.mxu1 %v2979_v59  ;;  %v3034_v57 = vld [vmem:[#allocation2 + $0x130] ss:$8 sps:$4 sm:$0xff]   ;;  %v4235_v58 = vmov 0  ;;  %v3039_v59 = vld [vmem:[#allocation2 + $0x24] ss:$8 sps:$4 sm:$0xff]  }
  0x6e   : > { %955 = vmatpush2.bf16.msra.mxu0 %v2981_v60  ;;  %1056 = vmatpush2.bf16.msra.mxu1 %v2982_v61  ;;  %v4237_v60 = vmov 0  ;;  %v3042_v61 = vld [vmem:[#allocation2 + $0x124] ss:$8 sps:$4 sm:$0xff]  }
  0x6f   : > { %956 = vmatprep.subr.bf16.mxu0 %v2983_v62  ;;  %1057 = vmatprep.subr.bf16.mxu1 %v2985_v63  ;;  %v4239_v62 = vmov 0  ;;  %v3037_v63 = vld [vmem:[#allocation2 + $0x20] ss:$8 sps:$4 sm:$0xff]  }
  0x72   : > { %957 = vmatpush2.bf16.msra.mxu0 %v2987_v0  ;;  %1058 = vmatpush2.bf16.msra.mxu1 %v2988_v1  ;;  %v4241_v0 = vmov 0  ;;  %v3040_v1 = vld [vmem:[#allocation2 + $0x120] ss:$8 sps:$4 sm:$0xff]  }
  0x73   : > { %958 = vmatprep.subr.bf16.mxu0 %v2989_v2  ;;  %1059 = vmatprep.subr.bf16.mxu1 %v2991_v3  ;;  %v3045_v2 = vld [vmem:[#allocation2 + $0x14] ss:$8 sps:$4 sm:$0xff]  }
  0x76   : > { %959 = vmatpush2.bf16.msra.mxu0 %v2993_v4  ;;  %1060 = vmatpush2.bf16.msra.mxu1 %v2994_v5  ;;  %v3048_v5 = vld [vmem:[#allocation2 + $0x114] ss:$8 sps:$4 sm:$0xff]  }
  0x77   : > { %960 = vmatprep.subr.bf16.mxu0 %v2995_v6  ;;  %1061 = vmatprep.subr.bf16.mxu1 %v2997_v7  ;;  %v3043_v6 = vld [vmem:[#allocation2 + $0x10] ss:$8 sps:$4 sm:$0xff]  }
  0x78   : > { %v3046_v7 = vld [vmem:[#allocation2 + $0x110] ss:$8 sps:$4 sm:$0xff]  }
  0x7a   : > { %961 = vmatpush2.bf16.msra.mxu0 %v2999_v8  ;;  %1062 = vmatpush2.bf16.msra.mxu1 %v3000_v9  ;;  %v4243_v8 = vmov 0  ;;  %v3051_v9 = vld [vmem:[#allocation2 + $0x4] ss:$8 sps:$4 sm:$0xff]  }
  0x7b   : > { %962 = vmatprep.subr.bf16.mxu0 %v3001_v10  ;;  %1063 = vmatprep.subr.bf16.mxu1 %v3003_v11  ;;  %v4245_v10 = vmov 0  ;;  %v3054_v11 = vld [vmem:[#allocation2 + $0x104] ss:$8 sps:$4 sm:$0xff]  }
  0x7e   : > { %963 = vmatpush2.bf16.msra.mxu0 %v3005_v12  ;;  %1064 = vmatpush2.bf16.msra.mxu1 %v3006_v13  ;;  %v4247_v12 = vmov 0  ;;  %v3049_v13 = vld [vmem:[#allocation2] ss:$8 sps:$4 sm:$0xff]  }
  0x7f   : > { %1454 = vmatprep.subr.bf16.mxu0 %v3009_v14  ;;  %1555 = vmatprep.subr.bf16.mxu1 %v3012_v15  ;;  %v4249_v14 = vmov 0  ;;  %v3052_v15 = vld [vmem:[#allocation2 + $0x100] ss:$8 sps:$4 sm:$0xff]  }
  0xc2   : > { %v269_v18 = vpop.permute.xlu1 %268  ;;  %v263_v19 = vpop.permute.xlu0 %262 }
  0xc3   : > { %vm301_vm0 = vcmp.eq.s32.totalorder %v263_v19, %v3501_v20  ;;  %vm303_vm5 = vcmp.eq.s32.totalorder %v263_v19, %v3504_v21  ;;  %vm300_vm8 = vcmp.eq.s32.totalorder %v263_v19, %v3498_v17  ;;  %vm309_vm9 = vcmp.eq.s32.totalorder %v269_v18, %v3501_v20 }
  0xc4   : > { %vm302_vm12 = vcmp.eq.s32.totalorder %v263_v19, %v3507_v23  ;;  %vm311_vm13 = vcmp.eq.s32.totalorder %v269_v18, %v3504_v21 }
  0xc6   : > { %v266_v22 = vpop.permute.xlu0 %265  ;;  %v272_v25 = vpop.permute.xlu1 %271 }
  0xc7   : > { %vm305_vm1 = vcmp.eq.s32.totalorder %v266_v22, %v3501_v20  ;;  %vm307_vm2 = vcmp.eq.s32.totalorder %v266_v22, %v3504_v21  ;;  %vm304_vm3 = vcmp.eq.s32.totalorder %v266_v22, %v3498_v17  ;;  %vm306_vm6 = vcmp.eq.s32.totalorder %v266_v22, %v3507_v23  ;;  %v3060_v22 = vld [vmem:[#allocation2 + $0x1f4] ss:$8 sps:$4 sm:$0xff]  }
  0xc8   : > { %vm3513_vm4 = vmpackc.low %vm305_vm1, %vm301_vm0  ;;  %vm313_vm10 = vcmp.eq.s32.totalorder %v272_v25, %v3501_v20  ;;  %vm315_vm14 = vcmp.eq.s32.totalorder %v272_v25, %v3504_v21 }
  0xc9   : > { %2530 = vmatprep.mubr.msk.bf16.mxu0 %vm3513_vm4, %v3353_v27  ;;  %vm3522_vm7 = vmpackc.low %vm307_vm2, %vm303_vm5  ;;  %vm308_vm2 = vcmp.eq.s32.totalorder %v269_v18, %v3498_v17  ;;  %vm310_vm5 = vcmp.eq.s32.totalorder %v269_v18, %v3507_v23 }
  0xca   : > { %2558 = vmatprep.mubr.msk.bf16.mxu1 %vm3522_vm7, %v3353_v27  ;;  %vm3532_vm11 = vmpackc.low %vm304_vm3, %vm300_vm8  ;;  %vm312_vm3 = vcmp.eq.s32.totalorder %v272_v25, %v3498_v17  ;;  %v278_v39 = vpop.permute.xlu1 %277  ;;  %v275_v40 = vpop.permute.xlu0 %274 }
  0xcb   : > { %2532 = vmatmul.mubr.msk.bf16.vlgmr.msra.gmra.mxu0 %vm3532_vm11, %v3353_v27  ;;  %vm3544_vm15 = vmpackc.low %vm306_vm6, %vm302_vm12  ;;  %vm314_vm6 = vcmp.eq.s32.totalorder %v272_v25, %v3507_v23  ;;  %vm321_vm12 = vcmp.eq.s32.totalorder %v278_v39, %v3501_v20  ;;  %v3058_v25 = vld [vmem:[#allocation2 + $0x1f0] ss:$8 sps:$4 sm:$0xff]  }
  0xcc   : > { %2560 = vmatmul.mubr.msk.bf16.vlgmr.msra.gmra.mxu1 %vm3544_vm15, %v3353_v27  ;;  %1455 = vmatpush1.bf16.msra.mxu0 %v3007_v24  ;;  %vm3551_vm0 = vmpackc.low %vm313_vm10, %vm309_vm9  ;;  %vm317_vm10 = vcmp.eq.s32.totalorder %v275_v40, %v3501_v20  ;;  %v3055_v24 = vld [vmem:[#allocation2 + $0xf0] ss:$8 sps:$4 sm:$0xff]  }
  0xcd   : > { %1556 = vmatpush1.bf16.msra.mxu1 %v3010_v29  ;;  %1456 = vmatprep.subr.bf16.mxu0 %v3015_v30  ;;  %vm3555_vm1 = vmpackc.low %vm315_vm14, %vm311_vm13  ;;  %vm319_vm13 = vcmp.eq.s32.totalorder %v275_v40, %v3504_v21  ;;  %vm323_vm14 = vcmp.eq.s32.totalorder %v278_v39, %v3504_v21  ;;  %v4251_v29 = vmov 0  ;;  %v3063_v30 = vld [vmem:[#allocation2 + $0xe4] ss:$8 sps:$4 sm:$0xff]  }
  0xce   : > { %v4226_v37 = vsel %vm3555_vm1, 4294967295, %v4225_v37  ;;  %1557 = vmatprep.subr.bf16.mxu1 %v3018_v32  ;;  %2534 = vmatprep.mubr.msk.bf16.mxu0 %vm3551_vm0, %v3353_v27  ;;  %vm3569_vm8 = vmpackc.low %vm312_vm3, %vm308_vm2  ;;  %v284_v53 = vpop.permute.xlu1 %283  ;;  %v281_v54 = vpop.permute.xlu0 %280  ;;  %v4253_v32 = vmov 0 }
  0xcf   : > { %2562 = vmatprep.mubr.msk.bf16.mxu1 %vm3555_vm1, %v3353_v27  ;;  %v4228_v43 = vsel %vm3569_vm8, 4294967295, %v4227_v43  ;;  %vm3573_vm9 = vmpackc.low %vm314_vm6, %vm310_vm5  ;;  %vm316_vm5 = vcmp.eq.s32.totalorder %v275_v40, %v3498_v17  ;;  %vm320_vm6 = vcmp.eq.s32.totalorder %v278_v39, %v3498_v17 }
  0xd0   : > { %1457 = vmatpush1.bf16.msra.mxu0 %v3013_v34  ;;  %v4230_v45 = vsel %vm3573_vm9, 4294967295, %v4229_v45  ;;  %vm3587_vm2 = vmpackc.low %vm321_vm12, %vm317_vm10  ;;  %vm318_vm10 = vcmp.eq.s32.totalorder %v275_v40, %v3507_v23  ;;  %vm322_vm12 = vcmp.eq.s32.totalorder %v278_v39, %v3507_v23  ;;  %v3066_v34 = vld [vmem:[#allocation2 + $0x1e4] ss:$8 sps:$4 sm:$0xff]   ;;  %v4258_v39 = vmov 0  ;;  %v3064_v40 = vld [vmem:[#allocation2 + $0x1e0] ss:$8 sps:$4 sm:$0xff]  }
  0xd1   : > { %1558 = vmatpush1.bf16.msra.mxu1 %v3016_v36  ;;  %1458 = vmatprep.subr.bf16.mxu0 %v3021_v38  ;;  %v4232_v48 = vsel %vm3587_vm2, 4294967295, %v4231_v48  ;;  %vm3594_vm3 = vmpackc.low %vm323_vm14, %vm319_vm13  ;;  %vm325_vm13 = vcmp.eq.s32.totalorder %v281_v54, %v3501_v20  ;;  %vm329_vm14 = vcmp.eq.s32.totalorder %v284_v53, %v3501_v20  ;;  %v4256_v36 = vmov 0  ;;  %v3061_v38 = vld [vmem:[#allocation2 + $0xe0] ss:$8 sps:$4 sm:$0xff]  }
  0xd2   : > { %1559 = vmatprep.subr.bf16.mxu1 %v3024_v41  ;;  %v4234_v50 = vsel %vm3594_vm3, 4294967295, %v4233_v50  ;;  %v290_v3 = vpop.permute.xlu1 %289  ;;  %v287_v4 = vpop.permute.xlu0 %286  ;;  %v3069_v41 = vld [vmem:[#allocation2 + $0xd4] ss:$8 sps:$4 sm:$0xff]  }
  0xd3   : > { %2536 = vmatmul.mubr.msk.bf16.gmra.mxu0 %vm3569_vm8, %v3353_v27  ;;  %vm3616_vm8 = vmpackc.low %vm322_vm12, %vm318_vm10  ;;  %vm324_vm10 = vcmp.eq.s32.totalorder %v281_v54, %v3498_v17  ;;  %vm328_vm12 = vcmp.eq.s32.totalorder %v284_v53, %v3498_v17 }
  0xd4   : > { %2564 = vmatmul.mubr.msk.bf16.gmra.mxu1 %vm3573_vm9, %v3353_v27  ;;  %1459 = vmatpush1.bf16.msra.mxu0 %v3019_v42  ;;  %vm331_vm9 = vcmp.eq.s32.totalorder %v284_v53, %v3504_v21  ;;  %v4238_v60 = vsel %vm3616_vm8, 4294967295, %v4237_v60 }
  0xd5   : > { %1560 = vmatpush1.bf16.msra.mxu1 %v3022_v44  ;;  %2538 = vmatprep.mubr.msk.bf16.mxu0 %vm3587_vm2, %v3353_v27  ;;  %vm327_vm2 = vcmp.eq.s32.totalorder %v281_v54, %v3504_v21  ;;  %v3072_v44 = vld [vmem:[#allocation2 + $0x1d4] ss:$8 sps:$4 sm:$0xff]  }
  0xd6   : > { %2566 = vmatprep.mubr.msk.bf16.mxu1 %vm3594_vm3, %v3353_v27  ;;  %1460 = vmatprep.subr.bf16.mxu0 %v3027_v46  ;;  %vm3607_vm3 = vmpackc.low %vm320_vm6, %vm316_vm5  ;;  %v296_v18 = vpop.permute.xlu1 %295  ;;  %v293_v19 = vpop.permute.xlu0 %292  ;;  %v3067_v46 = vld [vmem:[#allocation2 + $0xd0] ss:$8 sps:$4 sm:$0xff]  }
  0xd7   : > { %1561 = vmatprep.subr.bf16.mxu1 %v3030_v47  ;;  %v4236_v58 = vsel %vm3607_vm3, 4294967295, %v4235_v58  ;;  %vm3623_vm5 = vmpackc.low %vm329_vm14, %vm325_vm13  ;;  %vm333_vm13 = vcmp.eq.s32.totalorder %v287_v4, %v3501_v20  ;;  %vm337_vm14 = vcmp.eq.s32.totalorder %v290_v3, %v3501_v20  ;;  %v3070_v47 = vld [vmem:[#allocation2 + $0x1d0] ss:$8 sps:$4 sm:$0xff]  }
  0xd8   : > { %1461 = vmatpush1.bf16.msra.mxu0 %v3025_v49  ;;  %v4240_v62 = vsel %vm3623_vm5, 4294967295, %v4239_v62  ;;  %vm3630_vm6 = vmpackc.low %vm331_vm9, %vm327_vm2  ;;  %vm326_vm9 = vcmp.eq.s32.totalorder %v281_v54, %v3507_v23  ;;  %vm330_vm2 = vcmp.eq.s32.totalorder %v284_v53, %v3507_v23  ;;  %v3073_v53 = vld [vmem:[#allocation2 + $0xc0] ss:$8 sps:$4 sm:$0xff]  }
  0xd9   : > { %1562 = vmatpush1.bf16.msra.mxu1 %v3028_v51  ;;  %1462 = vmatprep.subr.bf16.mxu0 %v3033_v52  ;;  %v4242_v0 = vsel %vm3630_vm6, 4294967295, %v4241_v0  ;;  %v3075_v51 = vld [vmem:[#allocation2 + $0xc4] ss:$8 sps:$4 sm:$0xff]  }
  0xda   : > { %1563 = vmatprep.subr.bf16.mxu1 %v3036_v55  ;;  %v299_v42 = vpop.permute.xlu0 %298  ;;  %v3076_v55 = vld [vmem:[#allocation2 + $0x1c0] ss:$8 sps:$4 sm:$0xff]  }
  0xdb   : > { %2540 = vmatmul.mubr.msk.bf16.gmra.mxu0 %vm3607_vm3, %v3353_v27  ;;  %vm3652_vm3 = vmpackc.low %vm330_vm2, %vm326_vm9  ;;  %vm332_vm9 = vcmp.eq.s32.totalorder %v287_v4, %v3498_v17  ;;  %vm336_vm2 = vcmp.eq.s32.totalorder %v290_v3, %v3498_v17 }
  0xdc   : > { %2568 = vmatmul.mubr.msk.bf16.gmra.mxu1 %vm3616_vm8, %v3353_v27  ;;  %1463 = vmatpush1.bf16.msra.mxu0 %v3031_v56  ;;  %vm339_vm8 = vcmp.eq.s32.totalorder %v290_v3, %v3504_v21  ;;  %v4246_v10 = vsel %vm3652_vm3, 4294967295, %v4245_v10  ;;  %v3081_v56 = vld [vmem:[#allocation2 + $0xb4] ss:$8 sps:$4 sm:$0xff]  }
  0xdd   : > { %1564 = vmatpush1.bf16.msra.mxu1 %v3034_v57  ;;  %2542 = vmatprep.mubr.msk.bf16.mxu0 %vm3623_vm5, %v3353_v27  ;;  %vm335_vm5 = vcmp.eq.s32.totalorder %v287_v4, %v3504_v21  ;;  %v3084_v57 = vld [vmem:[#allocation2 + $0x1b4] ss:$8 sps:$4 sm:$0xff]  }
  0xde   : > { %2570 = vmatprep.mubr.msk.bf16.mxu1 %vm3630_vm6, %v3353_v27  ;;  %1464 = vmatprep.subr.bf16.mxu0 %v3039_v59  ;;  %vm3643_vm6 = vmpackc.low %vm328_vm12, %vm324_vm10  ;;  %v3079_v59 = vld [vmem:[#allocation2 + $0xb0] ss:$8 sps:$4 sm:$0xff]  }
  0xdf   : > { %1565 = vmatprep.subr.bf16.mxu1 %v3042_v61  ;;  %v4244_v8 = vsel %vm3643_vm6, 4294967295, %v4243_v8  ;;  %vm3659_vm10 = vmpackc.low %vm337_vm14, %vm333_vm13  ;;  %vm341_vm14 = vcmp.eq.s32.totalorder %v293_v19, %v3501_v20  ;;  %v3082_v61 = vld [vmem:[#allocation2 + $0x1b0] ss:$8 sps:$4 sm:$0xff]  }
  0xe0   : > { %1465 = vmatpush1.bf16.msra.mxu0 %v3037_v63  ;;  %v4248_v12 = vsel %vm3659_vm10, 4294967295, %v4247_v12  ;;  %vm3666_vm12 = vmpackc.low %vm339_vm8, %vm335_vm5  ;;  %vm334_vm8 = vcmp.eq.s32.totalorder %v287_v4, %v3507_v23  ;;  %vm338_vm5 = vcmp.eq.s32.totalorder %v290_v3, %v3507_v23  ;;  %v3088_v3 = vld [vmem:[#allocation2 + $0x1a0] ss:$8 sps:$4 sm:$0xff]   ;;  %v3093_v4 = vld [vmem:[#allocation2 + $0x94] ss:$8 sps:$4 sm:$0xff]  }
  0xe1   : > { %1566 = vmatpush1.bf16.msra.mxu1 %v3040_v1  ;;  %1466 = vmatprep.subr.bf16.mxu0 %v3045_v2  ;;  %v4250_v14 = vsel %vm3666_vm12, 4294967295, %v4249_v14  ;;  %vm3688_vm13 = vmpackc.low %vm338_vm5, %vm334_vm8  ;;  %vm344_vm5 = vcmp.eq.s32.totalorder %v296_v18, %v3498_v17  ;;  %v3087_v1 = vld [vmem:[#allocation2 + $0xa4] ss:$8 sps:$4 sm:$0xff]   ;;  %v3085_v2 = vld [vmem:[#allocation2 + $0xa0] ss:$8 sps:$4 sm:$0xff]  }
  0xe2   : > { %1567 = vmatprep.subr.bf16.mxu1 %v3048_v5  ;;  %v4254_v32 = vsel %vm3688_vm13, 4294967295, %v4253_v32  ;;  %v3096_v5 = vld [vmem:[#allocation2 + $0x194] ss:$8 sps:$4 sm:$0xff]  }
  0xe3   : > { %2544 = vmatmul.mubr.msk.bf16.gmra.mxu0 %vm3643_vm6, %v3353_v27 }
  0xe4   : > { %2572 = vmatmul.mubr.msk.bf16.gmra.mxu1 %vm3652_vm3, %v3353_v27  ;;  %1467 = vmatpush1.bf16.msra.mxu0 %v3043_v6  ;;  %vm343_vm3 = vcmp.eq.s32.totalorder %v293_v19, %v3504_v21  ;;  %v3091_v6 = vld [vmem:[#allocation2 + $0x90] ss:$8 sps:$4 sm:$0xff]  }
  0xe5   : > { %1568 = vmatpush1.bf16.msra.mxu1 %v3046_v7  ;;  %2546 = vmatprep.mubr.msk.bf16.mxu0 %vm3659_vm10, %v3353_v27  ;;  %vm3680_vm10 = vmpackc.low %vm336_vm2, %vm332_vm9  ;;  %vm4255_vm9 = vcmp.eq.s32.totalorder %v296_v18, %v3501_v20  ;;  %v3094_v7 = vld [vmem:[#allocation2 + $0x190] ss:$8 sps:$4 sm:$0xff]  }
  0xe6   : > { %2574 = vmatprep.mubr.msk.bf16.mxu1 %vm3666_vm12, %v3353_v27  ;;  %1468 = vmatprep.subr.bf16.mxu0 %v3051_v9  ;;  %vm347_vm12 = vcmp.eq.s32.totalorder %v296_v18, %v3504_v21  ;;  %v4252_v29 = vsel %vm3680_vm10, 4294967295, %v4251_v29  ;;  %vm3697_vm2 = vmpackc.low %vm4255_vm9, %vm341_vm14  ;;  %vm340_vm14 = vcmp.eq.s32.totalorder %v293_v19, %v3498_v17  ;;  %vm346_vm9 = vcmp.eq.s32.totalorder %v296_v18, %v3507_v23  ;;  %v3099_v9 = vld [vmem:[#allocation2 + $0x84] ss:$8 sps:$4 sm:$0xff]   ;;  %v3108_v18 = vld [vmem:[#allocation7 + $0x174] ss:$8 sps:$4 sm:$0xff]  }
  0xe7   : > { %1569 = vmatprep.subr.bf16.mxu1 %v3054_v11  ;;  %v4257_v36 = vsel %vm3697_vm2, 4294967295, %v4256_v36  ;;  %vm3704_vm8 = vmpackc.low %vm347_vm12, %vm343_vm3  ;;  %vm342_vm3 = vcmp.eq.s32.totalorder %v293_v19, %v3507_v23  ;;  %vm349_vm12 = vcmp.eq.s32.totalorder %v299_v42, %v3501_v20  ;;  %v3078_v20 = vld [vmem:[#allocation2 + $0x1c4] ss:$8 sps:$4 sm:$0xff]   ;;  %v3103_v19 = vld [vmem:[#allocation7 + $0x70] ss:$8 sps:$4 sm:$0xff]  }
  0xe8   : > { %1469 = vmatpush1.bf16.msra.mxu0 %v3049_v13  ;;  %v4259_v39 = vsel %vm3704_vm8, 4294967295, %v4258_v39  ;;  %v3102_v11 = vld [vmem:[#allocation2 + $0x184] ss:$8 sps:$4 sm:$0xff]   ;;  %v3097_v13 = vld [vmem:[#allocation2 + $0x80] ss:$8 sps:$4 sm:$0xff]  }
  0xe9   : > { %1570 = vmatpush1.bf16.msra.mxu1 %v3052_v15  ;;  %1470 = vmatprep.subr.bf16.mxu0 %v3057_v16  ;;  %v3100_v15 = vld [vmem:[#allocation2 + $0x180] ss:$8 sps:$4 sm:$0xff]   ;;  %v3105_v16 = vld [vmem:[#allocation7 + $0x74] ss:$8 sps:$4 sm:$0xff]  }
  0xea   : > { %1571 = vmatprep.subr.bf16.mxu1 %v3060_v22  ;;  %v3106_v22 = vld [vmem:[#allocation7 + $0x170] ss:$8 sps:$4 sm:$0xff]  }
  0xeb   : > { %2548 = vmatmul.mubr.msk.bf16.gmra.mxu0 %vm3680_vm10, %v3353_v27  ;;  %vm3731_vm10 = vmpackc.low %vm349_vm12, %vm349_vm12  ;;  %vm4272_vm12 = vnez %v4228_v43 }
  0xec   : > { %2576 = vmatmul.mubr.msk.bf16.gmra.mxu1 %vm3688_vm13, %v3353_v27  ;;  %1471 = vmatpush2.bf16.msra.mxu0 %v3055_v24  ;;  %vm3724_vm13 = vmpackc.low %vm346_vm9, %vm342_vm3  ;;  %vm350_vm9 = vcmp.eq.s32.totalorder %v299_v42, %v3507_v23  ;;  %v3090_v23 = vld [vmem:[#allocation2 + $0x1a4] ss:$8 sps:$4 sm:$0xff]  }
  0xed   : > { %1572 = vmatpush2.bf16.msra.mxu1 %v3058_v25  ;;  %2550 = vmatprep.mubr.msk.bf16.mxu0 %vm3697_vm2, %v3353_v27  ;;  %vm3717_vm2 = vmpackc.low %vm344_vm5, %vm340_vm14  ;;  %vm348_vm14 = vcmp.eq.s32.totalorder %v299_v42, %v3498_v17  ;;  %v4270_v17 = vmov 0  ;;  %v3111_v24 = vld [vmem:[#allocation7 + $0x64] ss:$8 sps:$4 sm:$0xff]  }
  0xee   : > { %2578 = vmatprep.mubr.msk.bf16.mxu1 %vm3704_vm8, %v3353_v27  ;;  %1472 = vmatprep.subr.bf16.mxu0 %v3063_v30  ;;  %vm351_vm8 = vcmp.eq.s32.totalorder %v299_v42, %v3504_v21  ;;  %vm3754_vm3 = vmpackc.low %vm350_vm9, %vm350_vm9  ;;  %v3114_v25 = vld [vmem:[#allocation7 + $0x164] ss:$8 sps:$4 sm:$0xff]   ;;  %v3109_v30 = vld [vmem:[#allocation7 + $0x60] ss:$8 sps:$4 sm:$0xff]   ;;  %vm4274_vm9 = vnez %v4232_v48 }
  0xef   : > { %1573 = vmatprep.subr.bf16.mxu1 %v3066_v34  ;;  %vm3738_vm5 = vmpackc.low %vm351_vm8, %vm351_vm8  ;;  %v4271_v17 = vsel %vm3754_vm3, 4294967295, %v4270_v17  ;;  %v3112_v34 = vld [vmem:[#allocation7 + $0x160] ss:$8 sps:$4 sm:$0xff]   ;;  %v3118_v42 = vld [vmem:[#allocation7 + $0x150] ss:$8 sps:$4 sm:$0xff]  }
  0xf0   : > { %1473 = vmatpush2.bf16.msra.mxu0 %v3061_v38  ;;  %vm3747_vm8 = vmpackc.low %vm348_vm14, %vm348_vm14  ;;  %v3117_v38 = vld [vmem:[#allocation7 + $0x54] ss:$8 sps:$4 sm:$0xff]   ;;  %vm4273_vm14 = vnez %v4230_v45 }
  0xf1   : > { %1574 = vmatpush2.bf16.msra.mxu1 %v3064_v40  ;;  %1474 = vmatprep.subr.bf16.mxu0 %v3069_v41  ;;  %v3120_v40 = vld [vmem:[#allocation7 + $0x154] ss:$8 sps:$4 sm:$0xff]   ;;  %v3115_v41 = vld [vmem:[#allocation7 + $0x50] ss:$8 sps:$4 sm:$0xff]  }
  0xf2   : > { %1575 = vmatprep.subr.bf16.mxu1 %v3072_v44  ;;  %v3123_v44 = vld [vmem:[#allocation7 + $0x44] ss:$8 sps:$4 sm:$0xff]  }
  0xf3   : > { %2552 = vmatmul.mubr.msk.bf16.gmra.mxu0 %vm3717_vm2, %v3353_v27 }
  0xf4   : > { %2580 = vmatmul.mubr.msk.bf16.gmra.mxu1 %vm3724_vm13, %v3353_v27  ;;  %1475 = vmatpush2.bf16.msra.mxu0 %v3067_v46  ;;  %v3126_v46 = vld [vmem:[#allocation7 + $0x144] ss:$8 sps:$4 sm:$0xff]  }
  0xf5   : > { %1576 = vmatpush2.bf16.msra.mxu1 %v3070_v47  ;;  %2554 = vmatprep.mubr.msk.bf16.mxu0 %vm3731_vm10, %v3353_v27  ;;  %v3121_v47 = vld [vmem:[#allocation7 + $0x40] ss:$8 sps:$4 sm:$0xff]  }
  0xf6   : > { %2582 = vmatprep.mubr.msk.bf16.mxu1 %vm3738_vm5, %v3353_v27  ;;  %1476 = vmatprep.subr.bf16.mxu0 %v3075_v51  ;;  %v3124_v51 = vld [vmem:[#allocation7 + $0x140] ss:$8 sps:$4 sm:$0xff]  }
  0xf7   : > { %1577 = vmatprep.subr.bf16.mxu1 %v3078_v20  ;;  %v3129_v20 = vld [vmem:[#allocation7 + $0x34] ss:$8 sps:$4 sm:$0xff]  }
  0xf8   : > { %1477 = vmatpush2.bf16.msra.mxu0 %v3073_v53  ;;  %v3132_v53 = vld [vmem:[#allocation7 + $0x134] ss:$8 sps:$4 sm:$0xff]  }
  0xf9   : > { %1578 = vmatpush2.bf16.msra.mxu1 %v3076_v55  ;;  %1478 = vmatprep.subr.bf16.mxu0 %v3081_v56  ;;  %v3127_v55 = vld [vmem:[#allocation7 + $0x30] ss:$8 sps:$4 sm:$0xff]  }
  0xfa   : > { %1579 = vmatprep.subr.bf16.mxu1 %v3084_v57  ;;  %v3130_v56 = vld [vmem:[#allocation7 + $0x130] ss:$8 sps:$4 sm:$0xff]   ;;  %v3135_v57 = vld [vmem:[#allocation7 + $0x24] ss:$8 sps:$4 sm:$0xff]  }
  0xfb   : > { %2556 = vmatmul.mubr.msk.bf16.gmra.mxu0 %vm3747_vm8, %v3353_v27 }
  0xfc   : > { %2584 = vmatmul.mubr.msk.bf16.gmra.mxu1 %vm3754_vm3, %v3353_v27  ;;  %1479 = vmatpush2.bf16.msra.mxu0 %v3079_v59  ;;  %v3138_v59 = vld [vmem:[#allocation7 + $0x124] ss:$8 sps:$4 sm:$0xff]  }
  0xfd   : > { %1580 = vmatpush2.bf16.msra.mxu1 %v3082_v61  ;;  %2650 = vmatprep.mubr.msk.bf16.mxu0 %vm3513_vm4, %v3353_v27  ;;  %v3133_v61 = vld [vmem:[#allocation7 + $0x20] ss:$8 sps:$4 sm:$0xff]  }
  0xfe   : > { %2678 = vmatprep.mubr.msk.bf16.mxu1 %vm3522_vm7, %v3353_v27  ;;  %1480 = vmatprep.subr.bf16.mxu0 %v3087_v1  ;;  %v3136_v1 = vld [vmem:[#allocation7 + $0x120] ss:$8 sps:$4 sm:$0xff]  }
  0xff   : > { %1581 = vmatprep.subr.bf16.mxu1 %v3090_v23  ;;  %v3141_v23 = vld [vmem:[#allocation7 + $0x14] ss:$8 sps:$4 sm:$0xff]  }
 0x100   : > { %1481 = vmatpush2.bf16.msra.mxu0 %v3085_v2  ;;  %v3144_v2 = vld [vmem:[#allocation7 + $0x114] ss:$8 sps:$4 sm:$0xff]  }
 0x101   : > { %1582 = vmatpush2.bf16.msra.mxu1 %v3088_v3  ;;  %1482 = vmatprep.subr.bf16.mxu0 %v3093_v4  ;;  %v3139_v3 = vld [vmem:[#allocation7 + $0x10] ss:$8 sps:$4 sm:$0xff]  }
 0x102   : > { %1583 = vmatprep.subr.bf16.mxu1 %v3096_v5  ;;  %v3142_v4 = vld [vmem:[#allocation7 + $0x110] ss:$8 sps:$4 sm:$0xff]   ;;  %v3147_v5 = vld [vmem:[#allocation7 + $0x4] ss:$8 sps:$4 sm:$0xff]  }
 0x104   : > { %1483 = vmatpush2.bf16.msra.mxu0 %v3091_v6  ;;  %v3150_v6 = vld [vmem:[#allocation7 + $0x104] ss:$8 sps:$4 sm:$0xff]  }
 0x105   : > { %1584 = vmatpush2.bf16.msra.mxu1 %v3094_v7  ;;  %1484 = vmatprep.subr.bf16.mxu0 %v3099_v9  ;;  %v3145_v7 = vld [vmem:[#allocation7] ss:$8 sps:$4 sm:$0xff]  }
 0x106   : > { %1585 = vmatprep.subr.bf16.mxu1 %v3102_v11  ;;  %v3148_v9 = vld [vmem:[#allocation7 + $0x100] ss:$8 sps:$4 sm:$0xff]   ;;  %v3153_v11 = vld [vmem:[#allocation7 + $0xf4] ss:$8 sps:$4 sm:$0xff]  }
 0x108   : > { %1485 = vmatpush2.bf16.msra.mxu0 %v3097_v13  ;;  %v3156_v13 = vld [vmem:[#allocation7 + $0x1f4] ss:$8 sps:$4 sm:$0xff]  }
 0x109   : > { %1586 = vmatpush2.bf16.msra.mxu1 %v3100_v15  ;;  %2040 = vmatprep.subr.bf16.mxu0 %v3105_v16  ;;  %v3151_v15 = vld [vmem:[#allocation7 + $0xf0] ss:$8 sps:$4 sm:$0xff]  }
 0x10a   : > { %2141 = vmatprep.subr.bf16.mxu1 %v3108_v18  ;;  %v3154_v16 = vld [vmem:[#allocation7 + $0x1f0] ss:$8 sps:$4 sm:$0xff]   ;;  %v3159_v18 = vld [vmem:[#allocation7 + $0xe4] ss:$8 sps:$4 sm:$0xff]  }
 0x10b   : > { %2652 = vmatmul.mubr.msk.bf16.vlgmr.msra.gmra.mxu0 %vm3532_vm11, %v3353_v27 }
 0x10c   : > { %2680 = vmatmul.mubr.msk.bf16.vlgmr.msra.gmra.mxu1 %vm3544_vm15, %v3353_v27  ;;  %2654 = vmatprep.mubr.msk.bf16.mxu0 %vm3551_vm0, %v3353_v27 }
 0x10d   : > { %2682 = vmatprep.mubr.msk.bf16.mxu1 %vm3555_vm1, %v3353_v27  ;;  %2041 = vmatpush1.bf16.msra.mxu0 %v3103_v19  ;;  %vm4275_vm1 = vnez %v4234_v50  ;;  %v3162_v19 = vld [vmem:[#allocation7 + $0x1e4] ss:$8 sps:$4 sm:$0xff]  }
 0x10e   : > { %2142 = vmatpush1.bf16.msra.mxu1 %v3106_v22  ;;  %2042 = vmatprep.subr.bf16.mxu0 %v3111_v24  ;;  %v3157_v22 = vld [vmem:[#allocation7 + $0xe0] ss:$8 sps:$4 sm:$0xff]  }
 0x10f   : > { %2143 = vmatprep.subr.bf16.mxu1 %v3114_v25  ;;  %v3160_v24 = vld [vmem:[#allocation7 + $0x1e0] ss:$8 sps:$4 sm:$0xff]   ;;  %v3165_v25 = vld [vmem:[#allocation7 + $0xd4] ss:$8 sps:$4 sm:$0xff]  }
 0x111   : > { %2043 = vmatpush1.bf16.msra.mxu0 %v3109_v30  ;;  %v3168_v30 = vld [vmem:[#allocation7 + $0x1d4] ss:$8 sps:$4 sm:$0xff]  }
 0x112   : > { %2144 = vmatpush1.bf16.msra.mxu1 %v3112_v34  ;;  %2044 = vmatprep.subr.bf16.mxu0 %v3117_v38  ;;  %v3163_v34 = vld [vmem:[#allocation7 + $0xd0] ss:$8 sps:$4 sm:$0xff]  }
 0x113   : > { %2656 = vmatmul.mubr.msk.bf16.gmra.mxu0 %vm4272_vm12, %v3353_v27  ;;  %2145 = vmatprep.subr.bf16.mxu1 %v3120_v40  ;;  %vm4279_vm12 = vnez %v4242_v0  ;;  %v3166_v38 = vld [vmem:[#allocation7 + $0x1d0] ss:$8 sps:$4 sm:$0xff]   ;;  %v3171_v40 = vld [vmem:[#allocation7 + $0xc4] ss:$8 sps:$4 sm:$0xff]  }
 0x114   : > { %2684 = vmatmul.mubr.msk.bf16.gmra.mxu1 %vm4273_vm14, %v3353_v27  ;;  %2658 = vmatprep.mubr.msk.bf16.mxu0 %vm4274_vm9, %v3353_v27  ;;  %vm4276_vm9 = vnez %v4236_v58  ;;  %vm4278_vm14 = vnez %v4240_v62 }
 0x115   : > { %2686 = vmatprep.mubr.msk.bf16.mxu1 %vm4275_vm1, %v3353_v27  ;;  %2045 = vmatpush1.bf16.msra.mxu0 %v3115_v41  ;;  %vm4277_vm1 = vnez %v4238_v60  ;;  %v3174_v41 = vld [vmem:[#allocation7 + $0x1c4] ss:$8 sps:$4 sm:$0xff]  }
 0x116   : > { %2146 = vmatpush1.bf16.msra.mxu1 %v3118_v42  ;;  %2046 = vmatprep.subr.bf16.mxu0 %v3123_v44  ;;  %v3169_v42 = vld [vmem:[#allocation7 + $0xc0] ss:$8 sps:$4 sm:$0xff]  }
 0x117   : > { %2147 = vmatprep.subr.bf16.mxu1 %v3126_v46  ;;  %v3172_v44 = vld [vmem:[#allocation7 + $0x1c0] ss:$8 sps:$4 sm:$0xff]   ;;  %v3177_v46 = vld [vmem:[#allocation7 + $0xb4] ss:$8 sps:$4 sm:$0xff]  }
 0x119   : > { %2047 = vmatpush1.bf16.msra.mxu0 %v3121_v47  ;;  %v3180_v47 = vld [vmem:[#allocation7 + $0x1b4] ss:$8 sps:$4 sm:$0xff]  }
 0x11a   : > { %2148 = vmatpush1.bf16.msra.mxu1 %v3124_v51  ;;  %2048 = vmatprep.subr.bf16.mxu0 %v3129_v20  ;;  %v3175_v51 = vld [vmem:[#allocation7 + $0xb0] ss:$8 sps:$4 sm:$0xff]  }
 0x11b   : > { %2660 = vmatmul.mubr.msk.bf16.gmra.mxu0 %vm4276_vm9, %v3353_v27  ;;  %2149 = vmatprep.subr.bf16.mxu1 %v3132_v53  ;;  %v3178_v20 = vld [vmem:[#allocation7 + $0x1b0] ss:$8 sps:$4 sm:$0xff]   ;;  %v3183_v53 = vld [vmem:[#allocation7 + $0xa4] ss:$8 sps:$4 sm:$0xff]  }
 0x11c   : > { %2688 = vmatmul.mubr.msk.bf16.gmra.mxu1 %vm4277_vm1, %v3353_v27  ;;  %2662 = vmatprep.mubr.msk.bf16.mxu0 %vm4278_vm14, %v3353_v27  ;;  %vm4281_vm14 = vnez %v4248_v12  ;;  %vm4282_vm1 = vnez %v4250_v14 }
 0x11d   : > { %2690 = vmatprep.mubr.msk.bf16.mxu1 %vm4279_vm12, %v3353_v27  ;;  %2049 = vmatpush1.bf16.msra.mxu0 %v3127_v55  ;;  %vm4280_vm12 = vnez %v4246_v10  ;;  %v3186_v55 = vld [vmem:[#allocation7 + $0x1a4] ss:$8 sps:$4 sm:$0xff]  }
 0x11e   : > { %2150 = vmatpush1.bf16.msra.mxu1 %v3130_v56  ;;  %2050 = vmatprep.subr.bf16.mxu0 %v3135_v57  ;;  %v3181_v56 = vld [vmem:[#allocation7 + $0xa0] ss:$8 sps:$4 sm:$0xff]  }
 0x11f   : > { %2151 = vmatprep.subr.bf16.mxu1 %v3138_v59  ;;  %v3184_v57 = vld [vmem:[#allocation7 + $0x1a0] ss:$8 sps:$4 sm:$0xff]   ;;  %v3189_v59 = vld [vmem:[#allocation7 + $0x94] ss:$8 sps:$4 sm:$0xff]  }
 0x121   : > { %2051 = vmatpush1.bf16.msra.mxu0 %v3133_v61  ;;  %v3192_v61 = vld [vmem:[#allocation7 + $0x194] ss:$8 sps:$4 sm:$0xff]  }
 0x122   : > { %2152 = vmatpush1.bf16.msra.mxu1 %v3136_v1  ;;  %2052 = vmatprep.subr.bf16.mxu0 %v3141_v23  ;;  %v3187_v1 = vld [vmem:[#allocation7 + $0x90] ss:$8 sps:$4 sm:$0xff]  }
 0x123   : > { %2664 = vmatmul.mubr.msk.bf16.gmra.mxu0 %vm3643_vm6, %v3353_v27  ;;  %2153 = vmatprep.subr.bf16.mxu1 %v3144_v2  ;;  %vm4286_vm6 = vnez %v4259_v39  ;;  %v3190_v23 = vld [vmem:[#allocation7 + $0x190] ss:$8 sps:$4 sm:$0xff]   ;;  %v3195_v2 = vld [vmem:[#allocation7 + $0x84] ss:$8 sps:$4 sm:$0xff]  }
 0x124   : > { %2692 = vmatmul.mubr.msk.bf16.gmra.mxu1 %vm4280_vm12, %v3353_v27  ;;  %2666 = vmatprep.mubr.msk.bf16.mxu0 %vm4281_vm14, %v3353_v27  ;;  %vm4283_vm14 = vnez %v4252_v29  ;;  %vm4285_vm12 = vnez %v4257_v36 }
 0x125   : > { %2694 = vmatprep.mubr.msk.bf16.mxu1 %vm4282_vm1, %v3353_v27  ;;  %2053 = vmatpush1.bf16.msra.mxu0 %v3139_v3  ;;  %vm4284_vm1 = vnez %v4254_v32  ;;  %v3193_v3 = vld [vmem:[#allocation7 + $0x80] ss:$8 sps:$4 sm:$0xff]  }
 0x126   : > { %2154 = vmatpush1.bf16.msra.mxu1 %v3142_v4  ;;  %2054 = vmatprep.subr.bf16.mxu0 %v3147_v5 }
 0x127   : > { %2155 = vmatprep.subr.bf16.mxu1 %v3150_v6 }
 0x129   : > { %2055 = vmatpush1.bf16.msra.mxu0 %v3145_v7 }
 0x12a   : > { %2156 = vmatpush1.bf16.msra.mxu1 %v3148_v9  ;;  %2056 = vmatprep.subr.bf16.mxu0 %v3153_v11 }
 0x12b   : > { %2668 = vmatmul.mubr.msk.bf16.gmra.mxu0 %vm4283_vm14, %v3353_v27  ;;  %2157 = vmatprep.subr.bf16.mxu1 %v3156_v13 }
 0x12c   : > { %2696 = vmatmul.mubr.msk.bf16.gmra.mxu1 %vm4284_vm1, %v3353_v27  ;;  %2670 = vmatprep.mubr.msk.bf16.mxu0 %vm4285_vm12, %v3353_v27 }
 0x12d   : > { %2698 = vmatprep.mubr.msk.bf16.mxu1 %vm4286_vm6, %v3353_v27  ;;  %2057 = vmatpush2.bf16.msra.mxu0 %v3151_v15 }
 0x12e   : > { %2158 = vmatpush2.bf16.msra.mxu1 %v3154_v16  ;;  %2058 = vmatprep.subr.bf16.mxu0 %v3159_v18 }
 0x12f   : > { %2159 = vmatprep.subr.bf16.mxu1 %v3162_v19 }
 0x131   : > { %2059 = vmatpush2.bf16.msra.mxu0 %v3157_v22 }
 0x132   : > { %2160 = vmatpush2.bf16.msra.mxu1 %v3160_v24  ;;  %2060 = vmatprep.subr.bf16.mxu0 %v3165_v25 }
 0x133   : > { %2672 = vmatmul.mubr.msk.bf16.gmra.mxu0 %vm3717_vm2, %v3353_v27  ;;  %2161 = vmatprep.subr.bf16.mxu1 %v3168_v30 }
 0x134   : > { %2700 = vmatmul.mubr.msk.bf16.gmra.mxu1 %vm3724_vm13, %v3353_v27  ;;  %2674 = vmatprep.mubr.msk.bf16.mxu0 %vm3731_vm10, %v3353_v27 }
 0x135   : > { %2702 = vmatprep.mubr.msk.bf16.mxu1 %vm3738_vm5, %v3353_v27  ;;  %2061 = vmatpush2.bf16.msra.mxu0 %v3163_v34 }
 0x136   : > { %2162 = vmatpush2.bf16.msra.mxu1 %v3166_v38  ;;  %2062 = vmatprep.subr.bf16.mxu0 %v3171_v40 }
 0x137   : > { %2163 = vmatprep.subr.bf16.mxu1 %v3174_v41 }
 0x139   : > { %2063 = vmatpush2.bf16.msra.mxu0 %v3169_v42 }
 0x13a   : > { %2164 = vmatpush2.bf16.msra.mxu1 %v3172_v44  ;;  %2064 = vmatprep.subr.bf16.mxu0 %v3177_v46 }
 0x13b   : > { %2676 = vmatmul.mubr.msk.bf16.gmra.mxu0 %vm3747_vm8, %v3353_v27  ;;  %2165 = vmatprep.subr.bf16.mxu1 %v3180_v47 }
 0x13c   : > { %2704 = vmatmul.mubr.msk.bf16.gmra.mxu1 %vm3754_vm3, %v3353_v27  ;;  %2770 = vmatprep.mubr.msk.bf16.mxu0 %vm3513_vm4, %v3353_v27  ;;  %vm4287_vm4 = vnez %v4226_v37  ;;  %vm4289_vm3 = vnez %v4230_v45 }
 0x13d   : > { %2065 = vmatpush2.bf16.msra.mxu0 %v3175_v51  ;;  %2798 = vmatprep.mubr.msk.bf16.mxu1 %vm3522_vm7, %v3353_v27  ;;  %vm4288_vm7 = vnez %v4228_v43 }
 0x13e   : > { %2166 = vmatpush2.bf16.msra.mxu1 %v3178_v20  ;;  %2066 = vmatprep.subr.bf16.mxu0 %v3183_v53 }
 0x13f   : > { %2167 = vmatprep.subr.bf16.mxu1 %v3186_v55 }
 0x141   : > { %2067 = vmatpush2.bf16.msra.mxu0 %v3181_v56 }
 0x142   : > { %2168 = vmatpush2.bf16.msra.mxu1 %v3184_v57  ;;  %2068 = vmatprep.subr.bf16.mxu0 %v3189_v59 }
 0x143   : > { %2169 = vmatprep.subr.bf16.mxu1 %v3192_v61 }
 0x145   : > { %2069 = vmatpush2.bf16.msra.mxu0 %v3187_v1 }
 0x146   : > { %2170 = vmatpush2.bf16.msra.mxu1 %v3190_v23  ;;  %2070 = vmatprep.subr.bf16.mxu0 %v3195_v2 }
 0x147   : > { %2171 = vmatprep.subr.bf16.mxu1 %v3198_v26 }
 0x149   : > { %2071 = vmatpush2.bf16.msra.mxu0 %v3193_v3 }
 0x14a   : > { %2172 = vmatpush2.bf16.msra.mxu1 %v3196_v28 }
 0x14c   : > { %2772 = vmatmul.mubr.msk.bf16.vlgmr.msra.gmra.mxu0 %vm3532_vm11, %v3353_v27  ;;  %vm4290_vm11 = vnez %v4232_v48 }
 0x14d   : > { %2800 = vmatmul.mubr.msk.bf16.vlgmr.msra.gmra.mxu1 %vm3544_vm15, %v3353_v27  ;;  %2774 = vmatprep.mubr.msk.bf16.mxu0 %vm3551_vm0, %v3353_v27  ;;  %vm4291_vm15 = vnez %v4234_v50  ;;  %vm4292_vm0 = vnez %v4238_v60 }
 0x14e   : > { %2802 = vmatprep.mubr.msk.bf16.mxu1 %vm4287_vm4, %v3353_v27  ;;  %vm4293_vm4 = vnez %v4240_v62 }
 0x154   : > { %2776 = vmatmul.mubr.msk.bf16.gmra.mxu0 %vm4288_vm7, %v3353_v27  ;;  %vm4295_vm7 = vnez %v4244_v8 }
 0x155   : > { %2804 = vmatmul.mubr.msk.bf16.gmra.mxu1 %vm4289_vm3, %v3353_v27  ;;  %2778 = vmatprep.mubr.msk.bf16.mxu0 %vm4290_vm11, %v3353_v27  ;;  %vm4294_vm3 = vnez %v4242_v0  ;;  %vm4296_vm11 = vnez %v4246_v10 }
 0x156   : > { %2806 = vmatprep.mubr.msk.bf16.mxu1 %vm4291_vm15, %v3353_v27  ;;  %vm4298_vm15 = vnez %v4250_v14 }
 0x15c   : > { %2780 = vmatmul.mubr.msk.bf16.gmra.mxu0 %vm4276_vm9, %v3353_v27  ;;  %vm4297_vm9 = vnez %v4248_v12 }
 0x15d   : > { %2808 = vmatmul.mubr.msk.bf16.gmra.mxu1 %vm4292_vm0, %v3353_v27  ;;  %2782 = vmatprep.mubr.msk.bf16.mxu0 %vm4293_vm4, %v3353_v27 }
 0x15e   : > { %2810 = vmatprep.mubr.msk.bf16.mxu1 %vm4294_vm3, %v3353_v27 }
 0x164   : > { %2784 = vmatmul.mubr.msk.bf16.gmra.mxu0 %vm4295_vm7, %v3353_v27 }
 0x165   : > { %2812 = vmatmul.mubr.msk.bf16.gmra.mxu1 %vm4296_vm11, %v3353_v27  ;;  %2786 = vmatprep.mubr.msk.bf16.mxu0 %vm4297_vm9, %v3353_v27 }
 0x166   : > { %2814 = vmatprep.mubr.msk.bf16.mxu1 %vm4298_vm15, %v3353_v27 }
 0x16c   : > { %2788 = vmatmul.mubr.msk.bf16.gmra.mxu0 %vm4283_vm14, %v3353_v27 }
 0x16d   : > { %2816 = vmatmul.mubr.msk.bf16.gmra.mxu1 %vm4284_vm1, %v3353_v27  ;;  %2790 = vmatprep.mubr.msk.bf16.mxu0 %vm4285_vm12, %v3353_v27  ;;  %vm4299_vm1 = vnez %v4271_v17 }
 0x16e   : > { %2818 = vmatprep.mubr.msk.bf16.mxu1 %vm4286_vm6, %v3353_v27 }
 0x174   : > { %2792 = vmatmul.mubr.msk.bf16.gmra.mxu0 %vm3717_vm2, %v3353_v27 }
 0x175   : > { %2820 = vmatmul.mubr.msk.bf16.gmra.mxu1 %vm3724_vm13, %v3353_v27  ;;  %2794 = vmatprep.mubr.msk.bf16.mxu0 %vm3731_vm10, %v3353_v27 }
 0x176   : > { %2822 = vmatprep.mubr.msk.bf16.mxu1 %vm3738_vm5, %v3353_v27 }
 0x17c   : > { %2796 = vmatmul.mubr.msk.bf16.gmra.mxu0 %vm3747_vm8, %v3353_v27 }
 0x17d   : > { %2824 = vmatmul.mubr.msk.bf16.gmra.mxu1 %vm4299_vm1, %v3353_v27 }
 0x18b   : > { %v966_v31 = vpop.f32.mrf.mxu0 }
 0x18c   : > { %v1067_v33 = vpop.f32.mrf.mxu1 }
 0x18d   : > { %v3929_v35 = vadd.f32 %v1067_v33, %v966_v31  ;;  %v968_v37 = vpop.f32.mrf.mxu0 }
 0x18e   : > { %v1069_v43 = vpop.f32.mrf.mxu1 }
 0x18f   : > { %v3931_v45 = vadd.f32 %v1069_v43, %v968_v37  ;;  %v970_v48 = vpop.f32.mrf.mxu0 }
 0x190   : > { %v1071_v50 = vpop.f32.mrf.mxu1 }
 0x191   : > { %v3933_v58 = vadd.f32 %v1071_v50, %v970_v48  ;;  %v972_v60 = vpop.f32.mrf.mxu0 }
 0x192   : > { %v1073_v62 = vpop.f32.mrf.mxu1 }
 0x193   : > { %v3935_v0 = vadd.f32 %v1073_v62, %v972_v60  ;;  %v976_v8 = vpop.f32.mrf.mxu0 }
 0x194   : > { %v1077_v10 = vpop.f32.mrf.mxu1 }
 0x195   : > { %v3937_v12 = vadd.f32 %v1077_v10, %v976_v8  ;;  %v978_v27 = vpop.f32.mrf.mxu0 }
 0x196   : > { %v1079_v14 = vpop.f32.mrf.mxu1 }
 0x197   : > { %v3939_v29 = vadd.f32 %v1079_v14, %v978_v27  ;;  %v980_v32 = vpop.f32.mrf.mxu0 }
 0x198   : > { %v1081_v36 = vpop.f32.mrf.mxu1 }
 0x199   : > { %v3941_v39 = vadd.f32 %v1081_v36, %v980_v32  ;;  %v982_v49 = vpop.f32.mrf.mxu0 }
 0x19a   : > { %v1083_v52 = vpop.f32.mrf.mxu1 }
 0x19b   : > { %v3943_v21 = vadd.f32 %v1083_v52, %v982_v49  ;;  %v986_v54 = vpop.f32.mrf.mxu0 }
 0x19c   : > { %v1087_v63 = vpop.f32.mrf.mxu1 }
 0x19d   : > { %v3945_v17 = vadd.f32 %v1087_v63, %v986_v54  ;;  %v988_v4 = vpop.f32.mrf.mxu0 }
 0x19e   : > { %v1089_v5 = vpop.f32.mrf.mxu1 }
 0x19f   : > { %v3947_v6 = vadd.f32 %v1089_v5, %v988_v4  ;;  %v990_v7 = vpop.f32.mrf.mxu0 }
 0x1a0   : > { %v1091_v9 = vpop.f32.mrf.mxu1 }
 0x1a1   : > { %v3949_v11 = vadd.f32 %v1091_v9, %v990_v7  ;;  %v992_v13 = vpop.f32.mrf.mxu0 }
 0x1a2   : > { %v1093_v15 = vpop.f32.mrf.mxu1 }
 0x1a3   : > { %v3951_v16 = vadd.f32 %v1093_v15, %v992_v13  ;;  %v996_v18 = vpop.f32.mrf.mxu0 }
 0x1a4   : > { %v1097_v19 = vpop.f32.mrf.mxu1 }
 0x1a5   : > { %v3953_v22 = vadd.f32 %v1097_v19, %v996_v18  ;;  %v998_v24 = vpop.f32.mrf.mxu0 }
 0x1a6   : > { %v1099_v25 = vpop.f32.mrf.mxu1 }
 0x1a7   : > { %v3955_v30 = vadd.f32 %v1099_v25, %v998_v24  ;;  %v1000_v34 = vpop.f32.mrf.mxu0 }
 0x1a8   : > { %v1101_v38 = vpop.f32.mrf.mxu1 }
 0x1a9   : > { %v3957_v40 = vadd.f32 %v1101_v38, %v1000_v34  ;;  %v1002_v41 = vpop.f32.mrf.mxu0 }
 0x1aa   : > { %v1103_v42 = vpop.f32.mrf.mxu1 }
 0x1ab   : > { %v3959_v44 = vadd.f32 %v1103_v42, %v1002_v41  ;;  %v1006_v46 = vpop.f32.mrf.mxu0 }
 0x1ac   : > { %v1107_v47 = vpop.f32.mrf.mxu1 }
 0x1ad   : > { %v3961_v51 = vadd.f32 %v1107_v47, %v1006_v46  ;;  %v1008_v20 = vpop.f32.mrf.mxu0 }
 0x1ae   : > { %v1109_v53 = vpop.f32.mrf.mxu1 }
 0x1af   : > { %v3963_v55 = vadd.f32 %v1109_v53, %v1008_v20  ;;  %v1010_v56 = vpop.f32.mrf.mxu0 }
 0x1b0   : > { %v1111_v57 = vpop.f32.mrf.mxu1 }
 0x1b1   : > { %v3965_v59 = vadd.f32 %v1111_v57, %v1010_v56  ;;  %v1012_v61 = vpop.f32.mrf.mxu0 }
 0x1b2   : > { %v1113_v1 = vpop.f32.mrf.mxu1 }
 0x1b3   : > { %v3967_v23 = vadd.f32 %v1113_v1, %v1012_v61  ;;  %v1016_v2 = vpop.f32.mrf.mxu0 }
 0x1b4   : > { %v1117_v26 = vpop.f32.mrf.mxu1 }
 0x1b5   : > { %v3969_v3 = vadd.f32 %v1117_v26, %v1016_v2  ;;  %v1018_v28 = vpop.f32.mrf.mxu0 }
 0x1b6   : > { %v1119_v31 = vpop.f32.mrf.mxu1 }
 0x1b7   : > { %v3971_v33 = vadd.f32 %v1119_v31, %v1018_v28  ;;  %v1020_v37 = vpop.f32.mrf.mxu0 }
 0x1b8   : > { %v1121_v43 = vpop.f32.mrf.mxu1 }
 0x1b9   : > { %v3973_v48 = vadd.f32 %v1121_v43, %v1020_v37  ;;  %v1022_v50 = vpop.f32.mrf.mxu0 }
 0x1ba   : > { %v1123_v60 = vpop.f32.mrf.mxu1 }
 0x1bb   : > { %v3975_v62 = vadd.f32 %v1123_v60, %v1022_v50  ;;  %v1026_v8 = vpop.f32.mrf.mxu0 }
 0x1bc   : > { %v1127_v10 = vpop.f32.mrf.mxu1 }
 0x1bd   : > { %v3977_v27 = vadd.f32 %v1127_v10, %v1026_v8  ;;  %v1028_v14 = vpop.f32.mrf.mxu0 }
 0x1be   : > { %v1129_v32 = vpop.f32.mrf.mxu1 }
 0x1bf   : > { %v3979_v36 = vadd.f32 %v1129_v32, %v1028_v14  ;;  %v1030_v49 = vpop.f32.mrf.mxu0 }
 0x1c0   : > { %v1131_v52 = vpop.f32.mrf.mxu1 }
 0x1c1   : > { %v1031_v54 = vpop.f32.mrf.mxu0 }
 0x1c2   : > { %v1132_v63 = vpop.f32.mrf.mxu1 }
 0x1cb   : > { %v1488_v4 = vpop.f32.mrf.mxu0 }
 0x1cc   : > { %v1489_v5 = vadd.f32 %v1488_v4, %v3929_v35  ;;  %v1589_v7 = vpop.f32.mrf.mxu1 }
 0x1cd   : > { %v1490_v9 = vpop.f32.mrf.mxu0 }
 0x1ce   : > { %v3982_v13 = vadd.f32 %v1589_v7, %v1489_v5  ;;  %v1491_v15 = vadd.f32 %v1490_v9, %v3931_v45  ;;  %v1591_v18 = vpop.f32.mrf.mxu1 }
 0x1cf   : > { %v1492_v19 = vpop.f32.mrf.mxu0 }
 0x1d0   : > { %v3985_v24 = vadd.f32 %v1591_v18, %v1491_v15  ;;  %v1493_v25 = vadd.f32 %v1492_v19, %v3933_v58  ;;  %v1593_v34 = vpop.f32.mrf.mxu1 }
 0x1d1   : > { %v1494_v38 = vpop.f32.mrf.mxu0 }
 0x1d2   : > { %v3988_v41 = vadd.f32 %v1593_v34, %v1493_v25  ;;  %v1495_v42 = vadd.f32 %v1494_v38, %v3935_v0  ;;  %v1595_v46 = vpop.f32.mrf.mxu1 }
 0x1d3   : > { %v1498_v35 = vpop.f32.mrf.mxu0 }
 0x1d4   : > { %v3991_v47 = vadd.f32 %v1595_v46, %v1495_v42  ;;  %v1499_v20 = vadd.f32 %v1498_v35, %v3937_v12  ;;  %v1599_v53 = vpop.f32.mrf.mxu1 }
 0x1d5   : > { %v1500_v45 = vpop.f32.mrf.mxu0 }
 0x1d6   : > { %v3994_v56 = vadd.f32 %v1599_v53, %v1499_v20  ;;  %v1501_v57 = vadd.f32 %v1500_v45, %v3939_v29  ;;  %v1601_v61 = vpop.f32.mrf.mxu1 }
 0x1d7   : > { %v1502_v58 = vpop.f32.mrf.mxu0 }
 0x1d8   : > { %v3997_v1 = vadd.f32 %v1601_v61, %v1501_v57  ;;  %v1503_v2 = vadd.f32 %v1502_v58, %v3941_v39  ;;  %v1603_v26 = vpop.f32.mrf.mxu1 }
 0x1d9   : > { %v1504_v0 = vpop.f32.mrf.mxu0 }
 0x1da   : > { %v4000_v28 = vadd.f32 %v1603_v26, %v1503_v2  ;;  %v1505_v31 = vadd.f32 %v1504_v0, %v3943_v21  ;;  %v1605_v37 = vpop.f32.mrf.mxu1 }
 0x1db   : > { %v1508_v12 = vpop.f32.mrf.mxu0 }
 0x1dc   : > { %v4003_v43 = vadd.f32 %v1605_v37, %v1505_v31  ;;  %v1509_v50 = vadd.f32 %v1508_v12, %v3945_v17  ;;  %v1609_v60 = vpop.f32.mrf.mxu1 }
 0x1dd   : > { %v1510_v29 = vpop.f32.mrf.mxu0 }
 0x1de   : > { %v4006_v8 = vadd.f32 %v1609_v60, %v1509_v50  ;;  %v1511_v10 = vadd.f32 %v1510_v29, %v3947_v6  ;;  %v1611_v14 = vpop.f32.mrf.mxu1 }
 0x1df   : > { %v1512_v39 = vpop.f32.mrf.mxu0 }
 0x1e0   : > { %v4009_v32 = vadd.f32 %v1611_v14, %v1511_v10  ;;  %v1513_v49 = vadd.f32 %v1512_v39, %v3949_v11  ;;  %v1613_v52 = vpop.f32.mrf.mxu1 }
 0x1e1   : > { %v1514_v21 = vpop.f32.mrf.mxu0 }
 0x1e2   : > { %v4012_v54 = vadd.f32 %v1613_v52, %v1513_v49  ;;  %v1515_v63 = vadd.f32 %v1514_v21, %v3951_v16  ;;  %v1615_v4 = vpop.f32.mrf.mxu1 }
 0x1e3   : > { %v1518_v17 = vpop.f32.mrf.mxu0 }
 0x1e4   : > { %v4015_v5 = vadd.f32 %v1615_v4, %v1515_v63  ;;  %v1519_v7 = vadd.f32 %v1518_v17, %v3953_v22  ;;  %v1619_v9 = vpop.f32.mrf.mxu1 }
 0x1e5   : > { %v1520_v6 = vpop.f32.mrf.mxu0 }
 0x1e6   : > { %v4018_v15 = vadd.f32 %v1619_v9, %v1519_v7  ;;  %v1521_v18 = vadd.f32 %v1520_v6, %v3955_v30  ;;  %v1621_v19 = vpop.f32.mrf.mxu1 }
 0x1e7   : > { %v1522_v11 = vpop.f32.mrf.mxu0 }
 0x1e8   : > { %v4021_v25 = vadd.f32 %v1621_v19, %v1521_v18  ;;  %v1523_v34 = vadd.f32 %v1522_v11, %v3957_v40  ;;  %v1623_v38 = vpop.f32.mrf.mxu1 }
 0x1e9   : > { %v1524_v16 = vpop.f32.mrf.mxu0 }
 0x1ea   : > { %v4024_v42 = vadd.f32 %v1623_v38, %v1523_v34  ;;  %v1525_v46 = vadd.f32 %v1524_v16, %v3959_v44  ;;  %v1625_v35 = vpop.f32.mrf.mxu1 }
 0x1eb   : > { %v1528_v22 = vpop.f32.mrf.mxu0 }
 0x1ec   : > { %v4027_v20 = vadd.f32 %v1625_v35, %v1525_v46  ;;  %v1529_v53 = vadd.f32 %v1528_v22, %v3961_v51  ;;  %v1629_v45 = vpop.f32.mrf.mxu1 }
 0x1ed   : > { %v1530_v30 = vpop.f32.mrf.mxu0 }
 0x1ee   : > { %v4030_v57 = vadd.f32 %v1629_v45, %v1529_v53  ;;  %v1531_v61 = vadd.f32 %v1530_v30, %v3963_v55  ;;  %v1631_v58 = vpop.f32.mrf.mxu1 }
 0x1ef   : > { %v1532_v40 = vpop.f32.mrf.mxu0 }
 0x1f0   : > { %v4033_v2 = vadd.f32 %v1631_v58, %v1531_v61  ;;  %v1533_v26 = vadd.f32 %v1532_v40, %v3965_v59  ;;  %v1633_v0 = vpop.f32.mrf.mxu1 }
 0x1f1   : > { %v1534_v44 = vpop.f32.mrf.mxu0 }
 0x1f2   : > { %v4036_v31 = vadd.f32 %v1633_v0, %v1533_v26  ;;  %v1535_v37 = vadd.f32 %v1534_v44, %v3967_v23  ;;  %v1635_v12 = vpop.f32.mrf.mxu1 }
 0x1f3   : > { %v1538_v51 = vpop.f32.mrf.mxu0 }
 0x1f4   : > { %v4039_v50 = vadd.f32 %v1635_v12, %v1535_v37  ;;  %v1539_v60 = vadd.f32 %v1538_v51, %v3969_v3  ;;  %v1639_v29 = vpop.f32.mrf.mxu1 }
 0x1f5   : > { %v1540_v55 = vpop.f32.mrf.mxu0 }
 0x1f6   : > { %v4042_v10 = vadd.f32 %v1639_v29, %v1539_v60  ;;  %v1541_v14 = vadd.f32 %v1540_v55, %v3971_v33  ;;  %v1641_v39 = vpop.f32.mrf.mxu1 }
 0x1f7   : > { %v1542_v59 = vpop.f32.mrf.mxu0 }
 0x1f8   : > { %v4045_v49 = vadd.f32 %v1641_v39, %v1541_v14  ;;  %v1543_v52 = vadd.f32 %v1542_v59, %v3973_v48  ;;  %v1643_v21 = vpop.f32.mrf.mxu1 }
 0x1f9   : > { %v1544_v23 = vpop.f32.mrf.mxu0 }
 0x1fa   : > { %v4048_v63 = vadd.f32 %v1643_v21, %v1543_v52  ;;  %v1545_v4 = vadd.f32 %v1544_v23, %v3975_v62  ;;  %v1645_v3 = vpop.f32.mrf.mxu1 }
 0x1fb   : > { %v1548_v17 = vpop.f32.mrf.mxu0 }
 0x1fc   : > { %v4051_v7 = vadd.f32 %v1645_v3, %v1545_v4  ;;  %v1549_v33 = vadd.f32 %v1548_v17, %v3977_v27  ;;  %v1649_v9 = vpop.f32.mrf.mxu1 }
 0x1fd   : > { %v1550_v6 = vpop.f32.mrf.mxu0 }
 0x1fe   : > { %v4054_v18 = vadd.f32 %v1649_v9, %v1549_v33  ;;  %v1551_v48 = vadd.f32 %v1550_v6, %v3979_v36  ;;  %v1651_v19 = vpop.f32.mrf.mxu1 }
 0x1ff   : > { %v1552_v11 = vpop.f32.mrf.mxu0 }
 0x200   : > { %v4057_v34 = vadd.f32 %v1651_v19, %v1551_v48  ;;  %v1653_v38 = vpop.f32.mrf.mxu1 }
 0x201   : > { %v1553_v16 = vpop.f32.mrf.mxu0 }
 0x202   : > { %v1654_v62 = vpop.f32.mrf.mxu1 }
 0x20c   : > { %v2074_v46 = vpop.f32.mrf.mxu0 }
 0x20d   : > { %v2175_v35 = vpop.f32.mrf.mxu1 }
 0x20e   : > { %v2176_v22 = vadd.f32 %v2175_v35, %v2074_v46  ;;  %v2076_v27 = vpop.f32.mrf.mxu0 }
 0x20f   : > { %v2177_v53 = vpop.f32.mrf.mxu1 }
 0x210   : > { %v2242_v45 = vadd.f32 %v2176_v22, %v3982_v13  ;;  %v2178_v30 = vadd.f32 %v2177_v53, %v2076_v27  ;;  %v2078_v61 = vpop.f32.mrf.mxu0 }
 0x211   : > { %v2179_v36 = vpop.f32.mrf.mxu1 }
 0x212   : > { %2268 = vst [vmem:[%s4063_s10] sm:$0xff] %v2242_v45  ;;  %v2243_v58 = vadd.f32 %v2178_v30, %v3985_v24  ;;  %v2180_v40 = vadd.f32 %v2179_v36, %v2078_v61  ;;  %v2080_v26 = vpop.f32.mrf.mxu0 }
 0x213   : > { %v2181_v0 = vpop.f32.mrf.mxu1 }
 0x214   : > { %2269 = vst [vmem:[%s4063_s10 + $0x8] sm:$0xff] %v2243_v58  ;;  %v2244_v44 = vadd.f32 %v2180_v40, %v3988_v41  ;;  %v2182_v13 = vadd.f32 %v2181_v0, %v2080_v26  ;;  %v2084_v37 = vpop.f32.mrf.mxu0 }
 0x215   : > { %v2185_v12 = vpop.f32.mrf.mxu1 }
 0x216   : > { %2270 = vst [vmem:[%s4063_s10 + $0x10] sm:$0xff] %v2244_v44  ;;  %v2245_v51 = vadd.f32 %v2182_v13, %v3991_v47  ;;  %v2186_v60 = vadd.f32 %v2185_v12, %v2084_v37  ;;  %v2086_v29 = vpop.f32.mrf.mxu0 }
 0x217   : > { %v2187_v55 = vpop.f32.mrf.mxu1 }
 0x218   : > { %2271 = vst [vmem:[%s4063_s10 + $0x18] sm:$0xff] %v2245_v51  ;;  %v2246_v24 = vadd.f32 %v2186_v60, %v3994_v56  ;;  %v2188_v14 = vadd.f32 %v2187_v55, %v2086_v29  ;;  %v2088_v39 = vpop.f32.mrf.mxu0 }
 0x219   : > { %v2189_v59 = vpop.f32.mrf.mxu1 }
 0x21a   : > { %2272 = vst [vmem:[%s4063_s10 + $0x20] sm:$0xff] %v2246_v24  ;;  %v2247_v41 = vadd.f32 %v2188_v14, %v3997_v1  ;;  %v2190_v52 = vadd.f32 %v2189_v59, %v2088_v39  ;;  %v2090_v21 = vpop.f32.mrf.mxu0 }
 0x21b   : > { %v2191_v23 = vpop.f32.mrf.mxu1 }
 0x21c   : > { %2273 = vst [vmem:[%s4063_s10 + $0x28] sm:$0xff] %v2247_v41  ;;  %v2248_v47 = vadd.f32 %v2190_v52, %v4000_v28  ;;  %v2192_v4 = vadd.f32 %v2191_v23, %v2090_v21  ;;  %v2094_v3 = vpop.f32.mrf.mxu0 }
 0x21d   : > { %v2195_v17 = vpop.f32.mrf.mxu1 }
 0x21e   : > { %2274 = vst [vmem:[%s4063_s10 + $0x30] sm:$0xff] %v2248_v47  ;;  %v2249_v56 = vadd.f32 %v2192_v4, %v4003_v43  ;;  %v2196_v33 = vadd.f32 %v2195_v17, %v2094_v3  ;;  %v2096_v9 = vpop.f32.mrf.mxu0 }
 0x21f   : > { %v2197_v6 = vpop.f32.mrf.mxu1 }
 0x220   : > { %2275 = vst [vmem:[%s4063_s10 + $0x38] sm:$0xff] %v2249_v56  ;;  %v2250_v1 = vadd.f32 %v2196_v33, %v4006_v8  ;;  %v2198_v48 = vadd.f32 %v2197_v6, %v2096_v9  ;;  %v2098_v19 = vpop.f32.mrf.mxu0 }
 0x221   : > { %v2199_v11 = vpop.f32.mrf.mxu1 }
 0x222   : > { %2276 = vst [vmem:[%s4063_s10 + $0x40] sm:$0xff] %v2250_v1  ;;  %v2251_v28 = vadd.f32 %v2198_v48, %v4009_v32  ;;  %v2200_v38 = vadd.f32 %v2199_v11, %v2098_v19  ;;  %v2100_v16 = vpop.f32.mrf.mxu0 }
 0x223   : > { %v2201_v62 = vpop.f32.mrf.mxu1 }
 0x224   : > { %2277 = vst [vmem:[%s4063_s10 + $0x48] sm:$0xff] %v2251_v28  ;;  %v2252_v43 = vadd.f32 %v2200_v38, %v4012_v54  ;;  %v2202_v46 = vadd.f32 %v2201_v62, %v2100_v16  ;;  %v2104_v35 = vpop.f32.mrf.mxu0 }
 0x225   : > { %v2205_v22 = vpop.f32.mrf.mxu1 }
 0x226   : > { %2278 = vst [vmem:[%s4063_s10 + $0x50] sm:$0xff] %v2252_v43  ;;  %v2253_v8 = vadd.f32 %v2202_v46, %v4015_v5  ;;  %v2206_v27 = vadd.f32 %v2205_v22, %v2104_v35  ;;  %v2106_v53 = vpop.f32.mrf.mxu0 }
 0x227   : > { %v2207_v45 = vpop.f32.mrf.mxu1 }
 0x228   : > { %2279 = vst [vmem:[%s4063_s10 + $0x58] sm:$0xff] %v2253_v8  ;;  %v2254_v32 = vadd.f32 %v2206_v27, %v4018_v15  ;;  %v2208_v30 = vadd.f32 %v2207_v45, %v2106_v53  ;;  %v2108_v61 = vpop.f32.mrf.mxu0 }
 0x229   : > { %v2209_v36 = vpop.f32.mrf.mxu1 }
 0x22a   : > { %2280 = vst [vmem:[%s4063_s10 + $0x60] sm:$0xff] %v2254_v32  ;;  %v2255_v54 = vadd.f32 %v2208_v30, %v4021_v25  ;;  %v2210_v58 = vadd.f32 %v2209_v36, %v2108_v61  ;;  %v2110_v40 = vpop.f32.mrf.mxu0 }
 0x22b   : > { %v2211_v26 = vpop.f32.mrf.mxu1 }
 0x22c   : > { %2281 = vst [vmem:[%s4063_s10 + $0x68] sm:$0xff] %v2255_v54  ;;  %v2256_v5 = vadd.f32 %v2210_v58, %v4024_v42  ;;  %v2212_v0 = vadd.f32 %v2211_v26, %v2110_v40  ;;  %v2114_v44 = vpop.f32.mrf.mxu0 }
 0x22d   : > { %v2215_v13 = vpop.f32.mrf.mxu1 }
 0x22e   : > { %2282 = vst [vmem:[%s4063_s10 + $0x70] sm:$0xff] %v2256_v5  ;;  %v2257_v15 = vadd.f32 %v2212_v0, %v4027_v20  ;;  %v2216_v37 = vadd.f32 %v2215_v13, %v2114_v44  ;;  %v2116_v12 = vpop.f32.mrf.mxu0 }
 0x22f   : > { %v2217_v51 = vpop.f32.mrf.mxu1 }
 0x230   : > { %2283 = vst [vmem:[%s4063_s10 + $0x78] sm:$0xff] %v2257_v15  ;;  %v2258_v25 = vadd.f32 %v2216_v37, %v4030_v57  ;;  %v2218_v60 = vadd.f32 %v2217_v51, %v2116_v12  ;;  %v2118_v29 = vpop.f32.mrf.mxu0 }
 0x231   : > { %v2219_v55 = vpop.f32.mrf.mxu1 }
 0x232   : > { %2284 = vst [vmem:[%s4063_s10 + $0x80] sm:$0xff] %v2258_v25  ;;  %v2259_v42 = vadd.f32 %v2218_v60, %v4033_v2  ;;  %v2220_v24 = vadd.f32 %v2219_v55, %v2118_v29  ;;  %v2120_v14 = vpop.f32.mrf.mxu0 }
 0x233   : > { %v2221_v39 = vpop.f32.mrf.mxu1 }
 0x234   : > { %2285 = vst [vmem:[%s4063_s10 + $0x88] sm:$0xff] %v2259_v42  ;;  %v2260_v20 = vadd.f32 %v2220_v24, %v4036_v31  ;;  %v2222_v59 = vadd.f32 %v2221_v39, %v2120_v14  ;;  %v2124_v41 = vpop.f32.mrf.mxu0 }
 0x235   : > { %v2225_v52 = vpop.f32.mrf.mxu1 }
 0x236   : > { %2286 = vst [vmem:[%s4063_s10 + $0x90] sm:$0xff] %v2260_v20  ;;  %v2261_v57 = vadd.f32 %v2222_v59, %v4039_v50  ;;  %v2226_v21 = vadd.f32 %v2225_v52, %v2124_v41  ;;  %v2126_v23 = vpop.f32.mrf.mxu0 }
 0x237   : > { %v2227_v47 = vpop.f32.mrf.mxu1 }
 0x238   : > { %2287 = vst [vmem:[%s4063_s10 + $0x98] sm:$0xff] %v2261_v57  ;;  %v2262_v2 = vadd.f32 %v2226_v21, %v4042_v10  ;;  %v2228_v4 = vadd.f32 %v2227_v47, %v2126_v23  ;;  %v2128_v3 = vpop.f32.mrf.mxu0 }
 0x239   : > { %v2229_v17 = vpop.f32.mrf.mxu1 }
 0x23a   : > { %2288 = vst [vmem:[%s4063_s10 + $0xa0] sm:$0xff] %v2262_v2  ;;  %v2263_v31 = vadd.f32 %v2228_v4, %v4045_v49  ;;  %v2230_v56 = vadd.f32 %v2229_v17, %v2128_v3  ;;  %v2130_v33 = vpop.f32.mrf.mxu0 }
 0x23b   : > { %v2231_v9 = vpop.f32.mrf.mxu1 }
 0x23c   : > { %2289 = vst [vmem:[%s4063_s10 + $0xa8] sm:$0xff] %v2263_v31  ;;  %v2264_v50 = vadd.f32 %v2230_v56, %v4048_v63  ;;  %v2232_v6 = vadd.f32 %v2231_v9, %v2130_v33  ;;  %v2134_v1 = vpop.f32.mrf.mxu0 }
 0x23d   : > { %v2235_v48 = vpop.f32.mrf.mxu1 }
 0x23e   : > { %2290 = vst [vmem:[%s4063_s10 + $0xb0] sm:$0xff] %v2264_v50  ;;  %v2265_v10 = vadd.f32 %v2232_v6, %v4051_v7  ;;  %v2236_v19 = vadd.f32 %v2235_v48, %v2134_v1  ;;  %v2136_v11 = vpop.f32.mrf.mxu0 }
 0x23f   : > { %v2237_v49 = vpop.f32.mrf.mxu1 }
 0x240   : > { %2291 = vst [vmem:[%s4063_s10 + $0xb8] sm:$0xff] %v2265_v10  ;;  %v2266_v28 = vadd.f32 %v2236_v19, %v4054_v18  ;;  %v2238_v38 = vadd.f32 %v2237_v49, %v2136_v11  ;;  %v2138_v63 = vpop.f32.mrf.mxu0 }
 0x241   : > { %v2239_v16 = vpop.f32.mrf.mxu1 }
 0x242   : > { %2292 = vst [vmem:[%s4063_s10 + $0xc0] sm:$0xff] %v2266_v28  ;;  %v2267_v7 = vadd.f32 %v2238_v38, %v4057_v34  ;;  %v2139_v62 = vpop.f32.mrf.mxu0 }
 0x243   : > { %v2240_v43 = vpop.f32.mrf.mxu1 }
 0x244   : > { %2293 = vst [vmem:[%s4063_s10 + $0xc8] sm:$0xff] %v2267_v7 }
 0x245   : > { %3290 = shalt.err (!%p3287_p0)
}
 0x246   : > { %s3291_s30 = scalar_lea.hbm %s4122_s14, 3328  ;;  %s3295_s6 = scalar_lea.hbm %s4171_s4, 6656 }
 0x247   : > { %p3292_p6 = scmp.ne.s32.totalorder %s4122_s14, %s3291_s30  ;;  %p3296_p1 = scmp.lt.s32.totalorder %s4122_s14, %s4171_s4 }
 0x248   : > { %p3297_p5 = scmp.lt.s32.totalorder %s3295_s6, %s3291_s30 }
 0x249   : > { %p3293_p9 = pnand %p3292_p6, %p4300_p3 }
 0x24a   : > { %p3298_p12 = por %p3297_p5, %p3296_p1 }
 0x24b   : > { %p3294_p13 = pneg %p3293_p9 }
 0x24d   : > { %p3299_p10 = pnand %p3298_p12, %p3294_p13 }
 0x24f   : > { %3302 = shalt.err (!%p3299_p10)
}
 0x250   : > { %s3355_s9 = smov 256   ;;  %s3356_s10 = smov 16  }
 0x251   : > { %2845 = dma.vmem_to_hbm [thread:$0]  (%p4300_p3), %s4115_s12, 3328, %s4122_s14, %s4127_s20, %s3355_s9, %s3355_s9, %s3356_s10  }
 0x252 PF: > { %p2867_p2 = scmp.ge.s32.totalorder %s3345_s18, 2  ;;  %s2324_s11 = sand.u32 1, %s3333_s15  }
 0x253   : > { %p4301_p4 = scmp.ne.s32.totalorder %s4208_s26, 0  ;;  %s2325_s13 = scalar_lea.sflag [#allocation4], %s2324_s11 }
 0x255   : > { %p2858_p7 = pnand %p2867_p2, %p4301_p4 }
 0x257   : > { %p2859_p8 = pneg %p2858_p7 }
 0x259   : > { %3328 = dma.done.wait (%p2859_p8), %s2325_s13, 3328  }
 0x25a   : > { %3330 = vsyncadd (%p2859_p8), %s2325_s13, 4294963968  ;;  %p16_p11 = scmp.ge.s32.totalorder %s3407_s21, 4   ;;  %s4302_s15 = smov %s3337_s16 }
 0x25b   : > { %s4303_s16 = smov %s3341_s17  ;;  %s4304_s17 = smov %s3418_s24 }
 0x25c   : > { %s4305_s18 = smov %s3407_s21  ;;  %18 = sbr.rel (!%p16_p11) target bundleno = 5 (0x5), region = 84 }
 0x261   :  { %2330 = vsyncpa [#allocation3], 1 }
 0x262   :  { %2332 = vsyncpa [#allocation3 + $0x1], 1 }
 0x263   :  { %2333 = vsyncpa [#allocation6], 1 }
 0x264   :  { %2334 = vsyncpa [#allocation4], 1 }
 0x265   :  { %2336 = vsyncpa [#allocation4 + $0x1], 1 }

</bundles_post_ra>
